<compile_context>
chip_gen: v7x
topology: tpu7x:2x2x1
jax: 0.10.0
libtpu: 0.0.40
codegen_flags: <defaults>
</compile_context>

<pallas_src>
import functools

import jax
import jax.numpy as jnp
from jax.experimental import pallas as pl
from jax.experimental.pallas import tpu as pltpu


def vq_kernel(z_ref, cb_ref,
              d_ref, prob_ref, onehot_ref, zq_ref, idx_ref,
              ohsum_ref, cossum_ref, *, n_valid, n_pad):
    z = z_ref[...].astype(jnp.float32)       # (TM, D)
    cb = cb_ref[...]                          # (K, D) row-L2-normalized, f32, resident
    tm = z.shape[0]
    K = cb.shape[0]

    # _cosine_sim(cb_normalized, z): codebook rows are unit norm already, so the
    # denominator collapses to the per-row ||z|| + 1e-6.
    z_sq = jnp.sum(z * z, axis=-1, keepdims=True)          # (TM, 1)
    z_norm = jnp.sqrt(z_sq)
    # z @ cb^T on the MXU (single resident codebook copy; contraction on e_dim).
    dots = jax.lax.dot_general(z, cb, (((1,), (1,)), ((), ())),
                               preferred_element_type=jnp.float32)   # (TM, K)
    d = dots / (z_norm + 1e-6)
    d_ref[...] = d.astype(d_ref.dtype)

    # exact softmax over the codebook axis (no approx reciprocal: rows must sum to 1)
    m = jnp.max(d, axis=1, keepdims=True)
    e = jnp.exp(d - m)
    prob_ref[...] = (e / jnp.sum(e, axis=1, keepdims=True)).astype(prob_ref.dtype)

    # argmax with first-occurrence tie-break (matches torch.argmax) + one-hot
    iota = jax.lax.broadcasted_iota(jnp.int32, (tm, K), 1)
    idx = jnp.min(jnp.where(d == m, iota, K), axis=1, keepdims=True)   # (TM, 1) i32
    idx_ref[...] = idx
    onehot = (iota == idx).astype(jnp.float32)
    onehot_ref[...] = onehot.astype(onehot_ref.dtype)

    # z_q = one_hot @ normalized codebook (reuses the same resident block)
    zq = jnp.dot(onehot, cb, preferred_element_type=jnp.float32)       # (TM, D)
    zq_ref[...] = zq.astype(zq_ref.dtype)

    # torch.cosine_similarity(z_q, z, dim=-1) -- only its tile-sum leaves the kernel.
    w12 = jnp.sum(zq * z, axis=-1, keepdims=True)
    w1 = jnp.sum(zq * zq, axis=-1, keepdims=True)
    cos = w12 / jnp.sqrt(jnp.maximum(w1 * z_sq, 1e-16))                # eps=1e-8 squared

    if n_valid == n_pad:
        # no padding: partial sums need no masking
        ohsum_ref[...] = jnp.sum(onehot, axis=0, keepdims=True)[None]   # (1, 1, K)
        cossum_ref[...] = jnp.sum(cos, axis=0, keepdims=True)[None]     # (1, 1, 1)
    else:
        rows = pl.program_id(0) * tm + jax.lax.broadcasted_iota(jnp.int32, (tm, 1), 0)
        valid = (rows < n_valid).astype(jnp.float32)
        ohsum_ref[...] = jnp.sum(onehot * valid, axis=0, keepdims=True)[None]
        cossum_ref[...] = jnp.sum(cos * valid, axis=0, keepdims=True)[None]


def _round_up(x, m):
    return (x + m - 1) // m * m


@functools.partial(jax.jit, static_argnames=("n_e", "e_dim", "beta", "store_dtype"))
def vector_quantizer_forward(z, embedding_weight, *, n_e, e_dim, beta,
                             store_dtype=jnp.float32):
    B, H, W, C = z.shape
    assert C == e_dim
    N = B * H * W
    z_flat = z.reshape(N, e_dim).astype(jnp.float32)

    # _normalize_cb with concat=False (e_dim <= 512) is a plain per-row L2
    # normalization; done once in the wrapper, kept f32 for torch parity.
    cb = embedding_weight.astype(jnp.float32)
    cb_norm = cb / jnp.sqrt(jnp.sum(cb * cb, axis=-1, keepdims=True))     # (K, D)

    # ---- tile-size selection (all static Python ints) -------------------------
    # Per-tile footprint: double-buffered pipelined I/O + in-kernel temporaries
    # (~4 * n_e f32 per row) + the resident (double-buffered) codebook block.
    def tile_bytes(tm):
        io = 2 * tm * (3 * n_e + 2 * e_dim + 2) * 4
        tmp = 4 * tm * n_e * 4
        return io + tmp + 2 * n_e * e_dim * 4

    VMEM_BUDGET = 26 * 1024 * 1024           # within a 32 MiB scoped limit (v7x-safe)
    TM = 1024
    while TM > 8 and tile_bytes(TM) > VMEM_BUDGET:
        TM //= 2

    # Prefer a TM that divides N exactly: avoids padding and (more importantly) the
    # post-kernel [:N] slices that would re-copy the dominant N x n_e output streams.
    tm_div = TM
    while tm_div > 8 and N % tm_div != 0:
        tm_div //= 2
    if N % tm_div == 0:
        TM = tm_div
        N_pad = N
    else:
        TM = min(TM, _round_up(N, 8))
        N_pad = _round_up(N, TM)

    # Give v7x's second TensorCore something to do (free on single-core v5e/v6e).
    while (N_pad // TM) < 2 and TM >= 16 and (TM // 2) % 8 == 0 and N_pad % (TM // 2) == 0:
        TM //= 2

    num_tiles = N_pad // TM
    if N_pad != N:
        z_flat = jnp.pad(z_flat, ((0, N_pad - N), (0, 0)))

    kernel = functools.partial(vq_kernel, n_valid=N, n_pad=N_pad)

    row_spec_k = pl.BlockSpec((TM, n_e), lambda i: (i, 0))
    row_spec_d = pl.BlockSpec((TM, e_dim), lambda i: (i, 0))

    outs = pl.pallas_call(
        kernel,
        grid=(num_tiles,),
        in_specs=[
            row_spec_d,                                          # z row tile
            pl.BlockSpec((n_e, e_dim), lambda i: (0, 0)),        # normalized codebook (resident)
        ],
        out_specs=(
            row_spec_k,                                          # d
            row_spec_k,                                          # softmax(d)
            row_spec_k,                                          # one-hot encodings
            row_spec_d,                                          # z_q (flattened)
            pl.BlockSpec((TM, 1), lambda i: (i, 0)),             # argmax indices
            pl.BlockSpec((1, 1, n_e), lambda i: (i, 0, 0)),      # per-tile sum(one-hot)
            pl.BlockSpec((1, 1, 1), lambda i: (i, 0, 0)),        # per-tile sum(cos)
        ),
        out_shape=(
            jax.ShapeDtypeStruct((N_pad, n_e), store_dtype),
            jax.ShapeDtypeStruct((N_pad, n_e), store_dtype),
            jax.ShapeDtypeStruct((N_pad, n_e), store_dtype),
            jax.ShapeDtypeStruct((N_pad, e_dim), jnp.float32),
            jax.ShapeDtypeStruct((N_pad, 1), jnp.int32),
            jax.ShapeDtypeStruct((num_tiles, 1, n_e), jnp.float32),
            jax.ShapeDtypeStruct((num_tiles, 1, 1), jnp.float32),
        ),
        compiler_params=pltpu.CompilerParams(
            dimension_semantics=("parallel",),
            vmem_limit_bytes=32 * 1024 * 1024,
        ),
    )(z_flat, cb_norm)

    d, prob, min_encodings, zq_flat, idx, ohsum, cossum = outs
    if N_pad != N:   # rare path: only when B*H*W is not a multiple of 8
        d = d[:N]
        prob = prob[:N]
        min_encodings = min_encodings[:N]
        zq_flat = zq_flat[:N]
        idx = idx[:N]
    z_q = zq_flat.reshape(z.shape)   # z + (z_q - z).detach() == z_q in forward value
    # TODO(synk): straight-through / detach() gradient semantics need a custom_vjp;
    # only the forward values match the torch module.

    # Tiny scalar glue from the per-tile partial sums (never re-reads the big arrays).
    e_mean = jnp.sum(ohsum[:, 0, :], axis=0) / N                 # (n_e,)
    mean_cos = jnp.sum(cossum) / N
    loss_kl = -jnp.sum(e_mean * jnp.log(1.0 / n_e / (e_mean + 1e-6)))
    loss = (1.0 + beta) * (1.0 - mean_cos)                       # forward value of _loss
    constrative_loss = jnp.float32(0.0)
    perplexity = jnp.exp(-jnp.sum(e_mean * jnp.log(e_mean + 1e-6)))

    return (loss, constrative_loss, loss_kl, prob, d, z_q, perplexity,
            min_encodings, idx)


if __name__ == "__main__":
    n_e, e_dim, beta = 128, 32, 0.25
    B, H, W = 2, 8, 8

    key = jax.random.PRNGKey(0)
    k_emb, k_z = jax.random.split(key)
    # nn.Embedding(n_e, e_dim).weight.data.uniform_(-1/n_e, 1/n_e)
    embedding_weight = jax.random.uniform(
        k_emb, (n_e, e_dim), dtype=jnp.float32, minval=-1.0 / n_e, maxval=1.0 / n_e)
    z = jax.random.normal(k_z, (B, H, W, e_dim), dtype=jnp.float32)

    outs = vector_quantizer_forward(z, embedding_weight, n_e=n_e, e_dim=e_dim, beta=beta)
    outs = jax.block_until_ready(outs)

    (loss, constrative_loss, loss_kl, prob, d, z_q, perplexity,
     min_encodings, min_encoding_indices) = outs

    # ---- sanity checks ---------------------------------------------------------
    N = B * H * W
    assert d.shape == (N, n_e)
    assert prob.shape == (N, n_e)
    assert z_q.shape == z.shape
    assert min_encodings.shape == (N, n_e)
    assert min_encoding_indices.shape == (N, 1)
    assert not bool(jnp.isnan(d).any())
    assert not bool(jnp.isnan(z_q).any())
    assert not bool(jnp.isnan(loss).any())
    assert not bool(jnp.isnan(loss_kl).any())
    assert not bool(jnp.isnan(perplexity).any())

    # softmax rows sum to 1 (exact normalization in the kernel)
    assert bool(jnp.all(jnp.abs(jnp.sum(prob, axis=1) - 1.0) < 1e-3))
    # one-hot rows sum to exactly 1
    assert bool(jnp.all(jnp.abs(jnp.sum(min_encodings, axis=1) - 1.0) < 1e-6))
    # kernel argmax agrees with argmax over the returned logits (same tie-break)
    assert bool(jnp.all(min_encoding_indices[:, 0] == jnp.argmax(d, axis=1)))
    # z_q rows are the selected normalized codebook rows
    cb_norm = embedding_weight / jnp.linalg.norm(embedding_weight, axis=-1, keepdims=True)
    gathered = cb_norm[min_encoding_indices[:, 0]]
    assert bool(jnp.max(jnp.abs(z_q.reshape(N, e_dim) - gathered)) < 1e-2)
    # logits match a pure-JAX reference of the module's cosine similarity
    z_flat = z.reshape(N, e_dim)
    d_ref = (z_flat @ cb_norm.T) / (jnp.linalg.norm(z_flat, axis=-1, keepdims=True) + 1e-6)
    assert bool(jnp.max(jnp.abs(d - d_ref)) < 5e-2)
    # perplexity bookkeeping stays in [1, n_e]
    assert bool(perplexity >= 1.0 - 1e-3) and bool(perplexity <= n_e + 1e-3)

    print("KERNEL_OK")
</pallas_src>

<mosaic_0001>
module attributes {stable_mosaic.version = 11 : i64} {
  func.func @vq_kernel(%arg0: i32, %arg1: memref<64x32xf32, #tpu.memory_space<vmem>>, %arg2: memref<128x32xf32, #tpu.memory_space<vmem>>, %arg3: memref<64x128xf32, #tpu.memory_space<vmem>>, %arg4: memref<64x128xf32, #tpu.memory_space<vmem>>, %arg5: memref<64x128xf32, #tpu.memory_space<vmem>>, %arg6: memref<64x32xf32, #tpu.memory_space<vmem>>, %arg7: memref<64x1xi32, #tpu.memory_space<vmem>>, %arg8: memref<1x1x128xf32, #tpu.memory_space<vmem>>, %arg9: memref<1x1x1xf32, #tpu.memory_space<vmem>>) attributes {dimension_semantics = [#tpu.dimension_semantics<parallel>], iteration_bounds = array<i64: 2>, scalar_prefetch = 0 : i64, scratch_operands = 0 : i64, tpu.core_type = #tpu.core_type<tc>, window_params = [{transform_indices = @transform_0, window_bounds = array<i64: 64, 32>}, {pipeline_mode = #tpu.pipeline_mode<synchronous>, transform_indices = @transform_1, window_bounds = array<i64: 128, 32>}, {transform_indices = @transform_2, window_bounds = array<i64: 64, 128>}, {transform_indices = @transform_3, window_bounds = array<i64: 64, 128>}, {transform_indices = @transform_4, window_bounds = array<i64: 64, 128>}, {transform_indices = @transform_5, window_bounds = array<i64: 64, 32>}, {transform_indices = @transform_6, window_bounds = array<i64: 64, 1>}, {transform_indices = @transform_7, window_bounds = array<i64: 1, 1, 128>}, {transform_indices = @transform_8, window_bounds = array<i64: 1, 1, 1>}]} {
    %c0 = arith.constant 0 : index
    %c0_0 = arith.constant 0 : index
    %0 = vector.load %arg1[%c0, %c0_0] : memref<64x32xf32, #tpu.memory_space<vmem>>, vector<64x32xf32>
    %c0_1 = arith.constant 0 : index
    %c0_2 = arith.constant 0 : index
    %1 = vector.load %arg2[%c0_1, %c0_2] : memref<128x32xf32, #tpu.memory_space<vmem>>, vector<128x32xf32>
    %2 = arith.mulf %0, %0 : vector<64x32xf32>
    %cst = arith.constant dense<0.000000e+00> : vector<64xf32>
    %3 = vector.multi_reduction <add>, %2, %cst [1] : vector<64x32xf32> to vector<64xf32>
    %4 = vector.shape_cast %3 : vector<64xf32> to vector<64x1xf32>
    %5 = math.sqrt %4 : vector<64x1xf32>
    %cst_3 = arith.constant dense<0.000000e+00> : vector<64x128xf32>
    %6 = tpu.matmul %0, %1, %cst_3 {dimension_numbers = #tpu.dot_dimension_numbers<[1], [1], [0], [0], [0, 0, 1, 0], [], []>} : vector<64x32xf32>, vector<128x32xf32>, vector<64x128xf32> -> vector<64x128xf32>
    %cst_4 = arith.constant 9.99999997E-7 : f32
    %7 = vector.broadcast %cst_4 : f32 to vector<64x1xf32>
    %8 = arith.addf %5, %7 : vector<64x1xf32>
    %9 = vector.broadcast %8 : vector<64x1xf32> to vector<64x128xf32>
    %10 = arith.divf %6, %9 : vector<64x128xf32>
    %c0_5 = arith.constant 0 : index
    %c0_6 = arith.constant 0 : index
    %11 = vector.load %arg3[%c0_5, %c0_6] : memref<64x128xf32, #tpu.memory_space<vmem>>, vector<64x128xf32>
    tpu.vector_store %arg3[%c0_5, %c0_6], %10 {strides = array<i32>} : memref<64x128xf32, #tpu.memory_space<vmem>>, vector<64x128xf32>,
    %cst_7 = arith.constant dense<0xFF800000> : vector<64xf32>
    %12 = vector.multi_reduction <maximumf>, %10, %cst_7 [1] : vector<64x128xf32> to vector<64xf32>
    %13 = vector.shape_cast %12 : vector<64xf32> to vector<64x1xf32>
    %14 = vector.broadcast %13 : vector<64x1xf32> to vector<64x128xf32>
    %15 = arith.subf %10, %14 : vector<64x128xf32>
    %16 = math.exp %15 : vector<64x128xf32>
    %cst_8 = arith.constant dense<0.000000e+00> : vector<64xf32>
    %17 = vector.multi_reduction <add>, %16, %cst_8 [1] : vector<64x128xf32> to vector<64xf32>
    %18 = vector.shape_cast %17 : vector<64xf32> to vector<64x1xf32>
    %19 = vector.broadcast %18 : vector<64x1xf32> to vector<64x128xf32>
    %20 = arith.divf %16, %19 : vector<64x128xf32>
    %c0_9 = arith.constant 0 : index
    %c0_10 = arith.constant 0 : index
    %21 = vector.load %arg4[%c0_9, %c0_10] : memref<64x128xf32, #tpu.memory_space<vmem>>, vector<64x128xf32>
    tpu.vector_store %arg4[%c0_9, %c0_10], %20 {strides = array<i32>} : memref<64x128xf32, #tpu.memory_space<vmem>>, vector<64x128xf32>,
    %22 = tpu.iota {dimensions = array<i32: 1>} : vector<64x128xi32>
    %23 = vector.broadcast %13 : vector<64x1xf32> to vector<64x128xf32>
    %24 = arith.cmpf oeq, %10, %23 : vector<64x128xf32>
    %c128_i32 = arith.constant 128 : i32
    %25 = vector.broadcast %c128_i32 : i32 to vector<64x128xi32>
    %26 = arith.select %24, %22, %25 : vector<64x128xi1>, vector<64x128xi32>
    %cst_11 = arith.constant dense<2147483647> : vector<64xi32>
    %27 = vector.multi_reduction <minsi>, %26, %cst_11 [1] : vector<64x128xi32> to vector<64xi32>
    %28 = vector.shape_cast %27 : vector<64xi32> to vector<64x1xi32>
    %c0_12 = arith.constant 0 : index
    %c0_13 = arith.constant 0 : index
    %29 = vector.load %arg7[%c0_12, %c0_13] : memref<64x1xi32, #tpu.memory_space<vmem>>, vector<64x1xi32>
    tpu.vector_store %arg7[%c0_12, %c0_13], %28 {strides = array<i32>} : memref<64x1xi32, #tpu.memory_space<vmem>>, vector<64x1xi32>,
    %30 = vector.broadcast %28 : vector<64x1xi32> to vector<64x128xi32>
    %31 = arith.cmpi eq, %22, %30 : vector<64x128xi32>
    %32 = arith.extui %31 : vector<64x128xi1> to vector<64x128xi32>
    %33 = arith.sitofp %32 : vector<64x128xi32> to vector<64x128xf32>
    %c0_14 = arith.constant 0 : index
    %c0_15 = arith.constant 0 : index
    %34 = vector.load %arg5[%c0_14, %c0_15] : memref<64x128xf32, #tpu.memory_space<vmem>>, vector<64x128xf32>
    tpu.vector_store %arg5[%c0_14, %c0_15], %33 {strides = array<i32>} : memref<64x128xf32, #tpu.memory_space<vmem>>, vector<64x128xf32>,
    %cst_16 = arith.constant dense<0.000000e+00> : vector<64x32xf32>
    %35 = tpu.matmul %33, %1, %cst_16 {dimension_numbers = #tpu.dot_dimension_numbers<[1], [0], [0], [1], [0, 0, 1, 1], [], []>} : vector<64x128xf32>, vector<128x32xf32>, vector<64x32xf32> -> vector<64x32xf32>
    %c0_17 = arith.constant 0 : index
    %c0_18 = arith.constant 0 : index
    %36 = vector.load %arg6[%c0_17, %c0_18] : memref<64x32xf32, #tpu.memory_space<vmem>>, vector<64x32xf32>
    tpu.vector_store %arg6[%c0_17, %c0_18], %35 {strides = array<i32>} : memref<64x32xf32, #tpu.memory_space<vmem>>, vector<64x32xf32>,
    %37 = arith.mulf %35, %0 : vector<64x32xf32>
    %cst_19 = arith.constant dense<0.000000e+00> : vector<64xf32>
    %38 = vector.multi_reduction <add>, %37, %cst_19 [1] : vector<64x32xf32> to vector<64xf32>
    %39 = vector.shape_cast %38 : vector<64xf32> to vector<64x1xf32>
    %40 = arith.mulf %35, %35 : vector<64x32xf32>
    %cst_20 = arith.constant dense<0.000000e+00> : vector<64xf32>
    %41 = vector.multi_reduction <add>, %40, %cst_20 [1] : vector<64x32xf32> to vector<64xf32>
    %42 = vector.shape_cast %41 : vector<64xf32> to vector<64x1xf32>
    %43 = arith.mulf %42, %4 : vector<64x1xf32>
    %cst_21 = arith.constant 1.000000e-16 : f32
    %44 = vector.broadcast %cst_21 : f32 to vector<64x1xf32>
    %45 = arith.maximumf %43, %44 : vector<64x1xf32>
    %46 = math.sqrt %45 : vector<64x1xf32>
    %47 = arith.divf %39, %46 : vector<64x1xf32>
    %cst_22 = arith.constant dense<0.000000e+00> : vector<128xf32>
    %48 = vector.multi_reduction <add>, %33, %cst_22 [0] : vector<64x128xf32> to vector<128xf32>
    %49 = vector.shape_cast %48 : vector<128xf32> to vector<1x128xf32>
    %50 = vector.shape_cast %49 : vector<1x128xf32> to vector<1x1x128xf32>
    %c0_23 = arith.constant 0 : index
    %c0_24 = arith.constant 0 : index
    %c0_25 = arith.constant 0 : index
    %51 = vector.load %arg8[%c0_23, %c0_24, %c0_25] : memref<1x1x128xf32, #tpu.memory_space<vmem>>, vector<1x1x128xf32>
    tpu.vector_store %arg8[%c0_23, %c0_24, %c0_25], %50 {strides = array<i32>} : memref<1x1x128xf32, #tpu.memory_space<vmem>>, vector<1x1x128xf32>,
    %cst_26 = arith.constant dense<0.000000e+00> : vector<1xf32>
    %52 = vector.multi_reduction <add>, %47, %cst_26 [0] : vector<64x1xf32> to vector<1xf32>
    %53 = vector.shape_cast %52 : vector<1xf32> to vector<1x1xf32>
    %54 = vector.shape_cast %53 : vector<1x1xf32> to vector<1x1x1xf32>
    %c0_27 = arith.constant 0 : index
    %c0_28 = arith.constant 0 : index
    %c0_29 = arith.constant 0 : index
    %55 = vector.load %arg9[%c0_27, %c0_28, %c0_29] : memref<1x1x1xf32, #tpu.memory_space<vmem>>, vector<1x1x1xf32>
    tpu.vector_store %arg9[%c0_27, %c0_28, %c0_29], %54 {strides = array<i32>} : memref<1x1x1xf32, #tpu.memory_space<vmem>>, vector<1x1x1xf32>,
    return
  }
  func.func @transform_0(%arg0: i32) -> (i32, i32) {
    %c0_i32 = arith.constant 0 : i32
    %c0_i32_0 = arith.constant 0 : i32
    return %arg0, %c0_i32 : i32, i32
  }
  func.func @transform_1(%arg0: i32) -> (i32, i32) {
    %c0_i32 = arith.constant 0 : i32
    %c0_i32_0 = arith.constant 0 : i32
    %c0_i32_1 = arith.constant 0 : i32
    return %c0_i32, %c0_i32_0 : i32, i32
  }
  func.func @transform_2(%arg0: i32) -> (i32, i32) {
    %c0_i32 = arith.constant 0 : i32
    %c0_i32_0 = arith.constant 0 : i32
    return %arg0, %c0_i32 : i32, i32
  }
  func.func @transform_3(%arg0: i32) -> (i32, i32) {
    %c0_i32 = arith.constant 0 : i32
    %c0_i32_0 = arith.constant 0 : i32
    return %arg0, %c0_i32 : i32, i32
  }
  func.func @transform_4(%arg0: i32) -> (i32, i32) {
    %c0_i32 = arith.constant 0 : i32
    %c0_i32_0 = arith.constant 0 : i32
    return %arg0, %c0_i32 : i32, i32
  }
  func.func @transform_5(%arg0: i32) -> (i32, i32) {
    %c0_i32 = arith.constant 0 : i32
    %c0_i32_0 = arith.constant 0 : i32
    return %arg0, %c0_i32 : i32, i32
  }
  func.func @transform_6(%arg0: i32) -> (i32, i32) {
    %c0_i32 = arith.constant 0 : i32
    %c0_i32_0 = arith.constant 0 : i32
    return %arg0, %c0_i32 : i32, i32
  }
  func.func @transform_7(%arg0: i32) -> (i32, i32, i32) {
    %c0_i32 = arith.constant 0 : i32
    %c0_i32_0 = arith.constant 0 : i32
    %c0_i32_1 = arith.constant 0 : i32
    return %arg0, %c0_i32, %c0_i32_0 : i32, i32, i32
  }
  func.func @transform_8(%arg0: i32) -> (i32, i32, i32) {
    %c0_i32 = arith.constant 0 : i32
    %c0_i32_0 = arith.constant 0 : i32
    %c0_i32_1 = arith.constant 0 : i32
    return %arg0, %c0_i32, %c0_i32_0 : i32, i32, i32
  }
}

</mosaic_0001>

<bundles_post_ra>
// kernel: vector_quantizer_forward.1
= control target key start
LH: loop header
LB: loop body
LE: loop exit
PB: predicated region body
PF: predicated region fallthrough
CT: control target
= control target key end

     0   :  { %s2979_s0 = inlined_call_operand.vmem [shape: f32[128,32], index: 0, kind: input, shape index: {}]   ;;  %s2980_s1 = inlined_call_operand.vmem [shape: f32[128,32], index: 1, kind: input, shape index: {}]   ;;  %s2981_s2 = inlined_call_operand.hbm [shape: f32[128,128], index: 2, kind: output, shape index: {0}]   ;;  %s2982_s3 = inlined_call_operand.hbm [shape: f32[128,128], index: 3, kind: output, shape index: {1}]   ;;  %s2983_s4 = inlined_call_operand.hbm [shape: f32[128,128], index: 4, kind: output, shape index: {2}]   ;;  %s2984_s5 = inlined_call_operand.hbm [shape: f32[128,32], index: 5, kind: output, shape index: {3}]   ;;  %s2985_s6 = inlined_call_operand.vmem [shape: s32[128,1], index: 6, kind: output, shape index: {4}]   ;;  %s2986_s7 = inlined_call_operand.vmem [shape: f32[2,1,128], index: 7, kind: output, shape index: {5}]   ;;  %s2987_s8 = inlined_call_operand.vmem [shape: f32[2,1,1], index: 8, kind: output, shape index: {6}]  }
   0x1   :  { %2989 = sst [smem:[#allocation13_spill]] %s2979_s0 }
   0x2   :  { %2990 = sst [smem:[#allocation14_spill]] %s2980_s1 }
   0x3   :  { %2991 = sst [smem:[#allocation15_spill]] %s2981_s2 }
   0x4   :  { %2992 = sst [smem:[#allocation16_spill]] %s2985_s6 }
   0x5   :  { %2993 = sst [smem:[#allocation17_spill]] %s2986_s7 }
   0x6   :  { %14 = vsyncpa [#allocation3], 0 }
   0x7   :  { %16 = vsyncpa [#allocation3 + $0x1], 0 }
   0x8   :  { %17 = vsyncpa [#allocation5], 0 }
   0x9   :  { %19 = vsyncpa [#allocation5 + $0x1], 0 }
   0xa   :  { %20 = vsyncpa [#allocation8], 0 }
   0xb   :  { %22 = vsyncpa [#allocation8 + $0x1], 0  ;;  %s2199_s27 = smov 0   ;;  %s2201_s28 = smov 0  }
   0xc   :  { %s2203_s29 = smov 0   ;;  %s2205_s30 = smov 0  }
   0xd LB: > { %s2220_s9 = sadd.s32 4294967295, %s2144_s30   ;;  %s2988_s10 = sadd.s32 4294967294, %s2144_s30   ;;  %s2144_s30 = sphi %s2205_s30, %s3010_s30   ;;  %s2140_s29 = sphi %s2203_s29, %s3009_s29   ;;  %s2136_s28 = sphi %s2201_s28, %s3008_s28   ;;  %s2132_s27 = sphi %s2199_s27, %s3007_s27  }
   0xe   : > { %s2224_s11 = sadd.s32 1, %s2144_s30   ;;  %s82_s12 = sadd.s32 1, %s2140_s29 }
   0xf   : > { %s79_s13 = ssub.s32 %s2144_s30, %s2224_s11  ;;  %p92_p0 = scmp.ne.s32.totalorder %s2140_s29, %s2136_s28 }
  0x10   : > { %p80_p1 = scmp.eq.s32.totalorder %s79_s13, 0  ;;  %p93_p2 = scmp.eq.s32.totalorder %s2220_s9, 1 }
  0x11   : > { %p98_p3 = scmp.ne.s32.totalorder %s2136_s28, %s2132_s27  ;;  %p99_p4 = scmp.eq.s32.totalorder %s2988_s10, 1 }
  0x12   : > { %s2237_s14 = scalar_select %p80_p1, %s2140_s29, %s82_s12  }
  0x13   : > { %p2239_p5 = por %p93_p2, %p92_p0  ;;  %p2243_p6 = por %p99_p4, %p98_p3 }
  0x14   : > { %2994 = sst [smem:[#allocation12_spill]] %s2237_s14  ;;  %p1553_p7 = scmp.ge.s32.totalorder %s2144_s30, 1 }
  0x15   : > { %p285_p8 = scmp.lt.s32.totalorder %s2144_s30, 3 }
  0x17   : > { %p286_p9 = pnand %p1553_p7, %p285_p8 }
  0x18   : > { %s2997_s1 = sld [smem:[#allocation14_spill]] (!%p286_p9)  ;;  %vm399_vm0 = vcmask (!%p286_p9), 261120   ;;  %s1558_s23 = sshll.u32 (!%p286_p9), %s2220_s9, 3 }
  0x19   : > { %289 = sbr.rel (%p286_p9) target bundleno = 1206 (0x4b6), region = 28  ;;  %vm2261_vm1 = vmpackc.low (!%p286_p9), %vm399_vm0, %vm399_vm0  ;;  %p346_p10 = scmp.lt.s32.totalorder (!%p286_p9), %s1558_s23, 15 }
  0x1a   : > { %s3000_s0 = sld [smem:[#allocation13_spill]] (!%p286_p9)  ;;  %s2475_s24 = sand.u32 (!%p286_p9), 1, %s2136_s28  }
  0x1b   : > { %s2478_s25 = sshll.u32 (!%p286_p9), %s2475_s24, 6  ;;  %s3001_s6 = sld [smem:[#allocation16_spill]] (!%p286_p9) }
  0x1c   : > { %p361_p11 = scmp.lt.s32.totalorder (!%p286_p9), %s2220_s9, 1  ;;  %s3002_s7 = sld [smem:[#allocation17_spill]] (!%p286_p9) }
  0x1d   : > { %s2648_s22 = scalar_lea.vmem (!%p286_p9), [#allocation7], %s2478_s25  ;;  %s2731_s26 = sshll.u32 (!%p286_p9), %s2220_s9, 10 }
  0x1e   : > { %v375_v0 = vld [vmem:[%s2997_s1] sm:$0xff] (!%p286_p9)  ;;  %v376_v1 = vld [vmem:[%s2997_s1 + $0x8] sm:$0xff] (!%p286_p9)  ;;  %v377_v2 = vld [vmem:[%s2997_s1 + $0x10] sm:$0xff] (!%p286_p9)  ;;  %s3003_s2 = sld [smem:[#allocation15_spill]] (!%p286_p9) }
  0x1f   : > { %v1756_v3 = vpack.c.bf16 (!%p286_p9), %v376_v1, %v375_v0  ;;  %v378_v5 = vld [vmem:[%s2997_s1 + $0x18] sm:$0xff] (!%p286_p9)  ;;  %v379_v7 = vld [vmem:[%s2997_s1 + $0x20] sm:$0xff] (!%p286_p9)  ;;  %v380_v8 = vld [vmem:[%s2997_s1 + $0x28] sm:$0xff] (!%p286_p9) }
  0x20   : > { %v1762_v6 = vpack.c.bf16 %v378_v5, %v377_v2  ;;  %s3012_s23 = smov (!%p346_p10, %s1558_s23), 15  ;;  %v1768_v9 = vpack.c.bf16 %v380_v8, %v379_v7  ;;  %v381_v13 = vld [vmem:[%s2997_s1 + $0x30] sm:$0xff]  ;;  %v382_v14 = vld [vmem:[%s2997_s1 + $0x38] sm:$0xff]  ;;  %v383_v25 = vld [vmem:[%s2997_s1 + $0x40] sm:$0xff] }
  0x21   : > { %1758 = vmatprep.subr.msk.bf16.mxu0 %vm2261_vm1, %v1756_v3  ;;  %1805 = vmatprep.subr.bf16.mxu1 %v1756_v3  ;;  %s1559_s18 = sshll.u32 %s3012_s23, 3  ;;  %v1774_v22 = vpack.c.bf16 %v382_v14, %v381_v13  ;;  %v384_v26 = vld [vmem:[%s2997_s1 + $0x48] sm:$0xff]  ;;  %v385_v34 = vld [vmem:[%s2997_s1 + $0x50] sm:$0xff]  ;;  %v386_v35 = vld [vmem:[%s2997_s1 + $0x58] sm:$0xff]  ;;  %s2592_s23 = scalar_lea.vmem [#allocation6], %s2478_s25 }
  0x22   : > { %1761 = vmatpush3.bf16.xpose.msk.msra.mxu0 %vm2261_vm1, %v1756_v3  ;;  %1807 = vmatpush3.bf16.msra.mxu1 %v1756_v3  ;;  %s2288_s21 = scalar_lea.vmem %s3000_s0, %s1559_s18  ;;  %v1780_v31 = vpack.c.bf16 %v384_v26, %v383_v25  ;;  %v1786_v40 = vpack.c.bf16 %v386_v35, %v385_v34  ;;  %v387_v41 = vld [vmem:[%s2997_s1 + $0x60] sm:$0xff]  ;;  %v388_v42 = vld [vmem:[%s2997_s1 + $0x68] sm:$0xff]  ;;  %v389_v46 = vld [vmem:[%s2997_s1 + $0x70] sm:$0xff]  ;;  %s2579_s13 = scalar_lea.vmem %s3001_s6, %s1559_s18 }
  0x23   : > { %1764 = vmatprep.subr.msk.bf16.mxu0 %vm2261_vm1, %v1762_v6  ;;  %1809 = vmatprep.subr.bf16.mxu1 %v1762_v6  ;;  %v2291_v10 = vld [vmem:[%s2288_s21] sm:$0xff]  ;;  %v2294_v11 = vld [vmem:[%s2288_s21 + $0x8] sm:$0xff]  ;;  %v2297_v12 = vld [vmem:[%s2288_s21 + $0x10] sm:$0xff]  ;;  %v1792_v45 = vpack.c.bf16 %v388_v42, %v387_v41  ;;  %s2641_s18 = scalar_select %p361_p11, %s2220_s9, 1 }
  0x24   : > { %1700 = vmatprep.mubr.msk.f32.mxu0 %vm399_vm0, %v2291_v10  ;;  %v2308_v15 = vld [vmem:[%s2288_s21 + $0x18] sm:$0xff]  ;;  %v391_v16 = vmul.f32 %v2291_v10, %v2291_v10  ;;  %v393_v17 = vmul.f32 %v2297_v12, %v2297_v12  ;;  %v392_v18 = vmul.f32 %v2294_v11, %v2294_v11  ;;  %v2321_v23 = vld [vmem:[%s2288_s21 + $0x20] sm:$0xff]  ;;  %v2324_v24 = vld [vmem:[%s2288_s21 + $0x28] sm:$0xff]  ;;  %s2737_s17 = scalar_lea.hbm %s3003_s2, %s2731_s26  ;;  %s2148_s0 = smov [#allocation2]  }
  0x25   : > { %v394_v19 = vmul.f32 %v2308_v15, %v2308_v15  ;;  %v395_v29 = vmul.f32 %v2321_v23, %v2321_v23  ;;  %v396_v30 = vmul.f32 %v2324_v24, %v2324_v24  ;;  %v2343_v32 = vld [vmem:[%s2288_s21 + $0x30] sm:$0xff]  ;;  %v2346_v33 = vld [vmem:[%s2288_s21 + $0x38] sm:$0xff]  ;;  %s2485_s21 = scalar_lea.vmem [#allocation2], %s2478_s25  ;;  %s363_s20 = scalar_lea.vmem %s3002_s7, %s2641_s18 }
  0x26   : > { %1811 = vmatpush3.bf16.msra.mxu1 %v1762_v6  ;;  %v400_v20 = vsel %vm399_vm0, %v391_v16, 0.0  ;;  %v406_v21 = vsel %vm399_vm0, %v393_v17, 0.0  ;;  %v403_v27 = vsel %vm399_vm0, %v392_v18, 0.0  ;;  %v397_v38 = vmul.f32 %v2343_v32, %v2343_v32  ;;  %v390_v47 = vld [vmem:[%s2997_s1 + $0x78] sm:$0xff]  ;;  %s1274_s19 = sshll.u32 %s2485_s21, 4  ;;  %s1994_s1 = sshll.u32 %s2148_s0, 4  ;;  %s2740_s19 = int_to_ptr.vmem [resolvable:$true] %s1274_s19  ;;  %s1995_s1 = int_to_ptr.vmem [resolvable:$false] %s1994_s1 }
  0x27   : > { %1813 = vmatprep.subr.bf16.mxu1 %v1768_v9  ;;  %401 = vadd.xlane.f32.xlu0 %v400_v20  ;;  %v409_v28 = vsel %vm399_vm0, %v394_v19, 0.0  ;;  %v412_v36 = vsel %vm399_vm0, %v395_v29, 0.0  ;;  %v415_v37 = vsel %vm399_vm0, %v396_v30, 0.0  ;;  %v398_v39 = vmul.f32 %v2346_v33, %v2346_v33  ;;  %s1990_s10 = scalar_lea.vmem %s2740_s19, 1024  ;;  %s1996_s6 = scalar_lea.vmem %s1995_s1, 2048 }
  0x28   : > { %407 = vadd.xlane.f32.xlu1 %v406_v21  ;;  %v418_v43 = vsel %vm399_vm0, %v397_v38, 0.0  ;;  %v1798_v48 = vpack.c.bf16 %v390_v47, %v389_v46  ;;  %p1991_p12 = scmp.ne.s32.totalorder %s2740_s19, %s1990_s10  ;;  %p1997_p1 = scmp.lt.s32.totalorder %s2740_s19, %s1995_s1 }
  0x29   : > { %v421_v44 = vsel %vm399_vm0, %v398_v39, 0.0  ;;  %p1998_p2 = scmp.lt.s32.totalorder %s1996_s6, %s1990_s10 }
  0x2a   : > { %1767 = vmatpush3.bf16.xpose.msk.msra.mxu0 %vm2261_vm1, %v1762_v6  ;;  %1815 = vmatpush3.bf16.msra.mxu1 %v1768_v9  ;;  %p1992_p13 = pnand %p1991_p12, %p2239_p5 }
  0x2b   : > { %1770 = vmatprep.subr.msk.bf16.mxu0 %vm2261_vm1, %v1768_v9  ;;  %1817 = vmatprep.subr.bf16.mxu1 %v1774_v22  ;;  %p1999_p3 = por %p1998_p2, %p1997_p1 }
  0x2c   : > { %404 = vadd.xlane.f32.xlu0 %v403_v27  ;;  %410 = vadd.xlane.f32.xlu1 %v409_v28  ;;  %p1993_p0 = pneg %p1992_p13 }
  0x2e   : > { %1819 = vmatpush3.bf16.msra.mxu1 %v1774_v22  ;;  %p2000_p4 = pnand %p1999_p3, %p1993_p0 }
  0x2f   : > { %1821 = vmatprep.subr.bf16.mxu1 %v1780_v31 }
  0x30   : > { %413 = vadd.xlane.f32.xlu0 %v412_v36  ;;  %416 = vadd.xlane.f32.xlu1 %v415_v37 }
  0x32   : > { %1773 = vmatpush3.bf16.xpose.msk.msra.mxu0 %vm2261_vm1, %v1768_v9  ;;  %1823 = vmatpush3.bf16.msra.mxu1 %v1780_v31 }
  0x33   : > { %1776 = vmatprep.subr.msk.bf16.mxu0 %vm2261_vm1, %v1774_v22  ;;  %1825 = vmatprep.subr.bf16.mxu1 %v1786_v40 }
  0x34   : > { %419 = vadd.xlane.f32.xlu0 %v418_v43  ;;  %422 = vadd.xlane.f32.xlu1 %v421_v44 }
  0x36   : > { %1827 = vmatpush3.bf16.msra.mxu1 %v1786_v40 }
  0x37   : > { %1829 = vmatprep.subr.bf16.mxu1 %v1792_v45 }
  0x3a   : > { %1779 = vmatpush3.bf16.xpose.msk.msra.mxu0 %vm2261_vm1, %v1774_v22  ;;  %1831 = vmatpush3.bf16.msra.mxu1 %v1792_v45 }
  0x3b   : > { %1782 = vmatprep.subr.msk.bf16.mxu0 %vm2261_vm1, %v1780_v31  ;;  %1833 = vmatprep.subr.bf16.mxu1 %v1798_v48 }
  0x3e   : > { %1835 = vmatpush3.bf16.msra.mxu1 %v1798_v48 }
  0x42   : > { %1785 = vmatpush3.bf16.xpose.msk.msra.mxu0 %vm2261_vm1, %v1780_v31 }
  0x43   : > { %1788 = vmatprep.subr.msk.bf16.mxu0 %vm2261_vm1, %v1786_v40 }
  0x4a   : > { %1791 = vmatpush3.bf16.xpose.msk.msra.mxu0 %vm2261_vm1, %v1786_v40 }
  0x4b   : > { %1794 = vmatprep.subr.msk.bf16.mxu0 %vm2261_vm1, %v1792_v45 }
  0x52   : > { %1797 = vmatpush3.bf16.xpose.msk.msra.mxu0 %vm2261_vm1, %v1792_v45 }
  0x53   : > { %1800 = vmatprep.subr.msk.bf16.mxu0 %vm2261_vm1, %v1798_v48 }
  0x5a   : > { %1803 = vmatpush3.bf16.xpose.msk.msra.mxu0 %vm2261_vm1, %v1798_v48 }
  0x61   : > { %1701 = vmatmul.mubr.msk.f32.vlgmr.msra.gmra.mrb[0].mxu0 %vm399_vm0, %v2294_v11 }
  0x62   : > { %1703 = vmatprep.mubr.msk.f32.mxu0 %vm399_vm0, %v2297_v12 }
  0x65   : > { %1704 = vmatmul.mubr.msk.f32.gmra.mrb[2].mxu0 %vm399_vm0, %v2308_v15 }
  0x66   : > { %1706 = vmatprep.mubr.msk.f32.mxu0 %vm399_vm0, %v2321_v23 }
  0x69   : > { %1707 = vmatmul.mubr.msk.f32.gmra.mrb[4].mxu0 %vm399_vm0, %v2324_v24 }
  0x6a   : > { %1709 = vmatprep.mubr.msk.f32.mxu0 %vm399_vm0, %v2343_v32 }
  0x6d   : > { %1710 = vmatmul.mubr.msk.f32.gmra.mrb[6].mxu0 %vm399_vm0, %v2346_v33 }
  0xb4   : > { %v2410_v49 = vpop.xlane.xlu0 %401 }
  0xb5   : > { %v2412_v50 = vpop.xlane.xlu1 %407  ;;  %vm426_vm3 = vcmp.eq.f32.partialorder %v2410_v49, inf  ;;  %v429_v0 = vand.u32 2147483648, %v2410_v49  ;;  %vm428_vm6 = vcmp.eq.f32.partialorder %v2410_v49, 0.0 }
  0xb6   : > { %vm440_vm7 = vcmp.eq.f32.partialorder %v2412_v50, inf  ;;  %v443_v7 = vand.u32 2147483648, %v2412_v50  ;;  %vm442_vm10 = vcmp.eq.f32.partialorder %v2412_v50, 0.0 }
  0xb9   : > { %v2414_v51 = vpop.xlane.xlu0 %404  ;;  %v2416_v52 = vpop.xlane.xlu1 %410 }
  0xba   : > { %1894 = vrsqrt.f32 %v2414_v51  ;;  %vm433_vm2 = vcmp.eq.f32.partialorder %v2414_v51, inf  ;;  %v436_v63 = vand.u32 2147483648, %v2414_v51  ;;  %vm435_vm4 = vcmp.eq.f32.partialorder %v2414_v51, 0.0 }
  0xbb   : > { %1896 = vrsqrt.f32 %v2410_v49  ;;  %vm447_vm5 = vcmp.eq.f32.partialorder %v2416_v52, inf  ;;  %v450_v8 = vand.u32 2147483648, %v2416_v52  ;;  %vm449_vm8 = vcmp.eq.f32.partialorder %v2416_v52, 0.0 }
  0xbc   : > { %1898 = vrsqrt.f32 %v2416_v52 }
  0xbd   : > { %v2420_v53 = vpop.xlane.xlu1 %416  ;;  %v2423_v54 = vpop.xlane.xlu0 %413  ;;  %1900 = vrsqrt.f32 %v2412_v50 }
  0xbe   : > { %1902 = vrsqrt.f32 %v2420_v53  ;;  %vm461_vm9 = vcmp.eq.f32.partialorder %v2420_v53, inf  ;;  %vm454_vm11 = vcmp.eq.f32.partialorder %v2423_v54, inf  ;;  %v457_v22 = vand.u32 2147483648, %v2423_v54 }
  0xbf   : > { %1904 = vrsqrt.f32 %v2423_v54  ;;  %v464_v25 = vand.u32 2147483648, %v2420_v53  ;;  %vm463_vm12 = vcmp.eq.f32.partialorder %v2420_v53, 0.0  ;;  %vm456_vm14 = vcmp.eq.f32.partialorder %v2423_v54, 0.0 }
  0xc1   : > { %v2428_v55 = vpop.xlane.xlu1 %422  ;;  %v2430_v57 = vpop.xlane.xlu0 %419 }
  0xc2   : > { %1906 = vrsqrt.f32 %v2428_v55  ;;  %vm475_vm13 = vcmp.eq.f32.partialorder %v2428_v55, inf  ;;  %vm468_vm15 = vcmp.eq.f32.partialorder %v2430_v57, inf  ;;  %v478_v36 = vand.u32 2147483648, %v2428_v55 }
  0xc3   : > { %1908 = vrsqrt.f32 %v2430_v57  ;;  %v471_v39 = vand.u32 2147483648, %v2430_v57  ;;  %vm477_vm1 = vcmp.eq.f32.partialorder %v2428_v55, 0.0 }
  0xc4   : > { %v1895_v56 = vpop.eup %1894 }
  0xc5   : > { %v1897_v58 = vpop.eup %1896  ;;  %v432_v59 = vmul.f32 %v1895_v56, %v2414_v51 }
  0xc6   : > { %v1899_v60 = vpop.eup %1898  ;;  %v425_v61 = vmul.f32 %v1897_v58, %v2410_v49 }
  0xc7   : > { %v1901_v62 = vpop.eup %1900  ;;  %v446_v1 = vmul.f32 %v1899_v60, %v2416_v52  ;;  %v434_v2 = vsel %vm433_vm2, %v2414_v51, %v432_v59  ;;  %vm470_vm2 = vcmp.eq.f32.partialorder %v2430_v57, 0.0 }
  0xc8   : > { %v1903_v3 = vpop.eup %1902  ;;  %v439_v4 = vmul.f32 %v1901_v62, %v2412_v50  ;;  %v427_v5 = vsel %vm426_vm3, %v2410_v49, %v425_v61  ;;  %v437_v9 = vsel %vm435_vm4, %v436_v63, %v434_v2 }
  0xc9   : > { %v1905_v6 = vpop.eup %1904  ;;  %v460_v13 = vmul.f32 %v1903_v3, %v2420_v53  ;;  %v430_v14 = vsel %vm428_vm6, %v429_v0, %v427_v5  ;;  %v448_v16 = vsel %vm447_vm5, %v2416_v52, %v446_v1  ;;  %v658_v21 = vadd.f32 1e-06, %v437_v9 }
  0xca   : > { %v453_v18 = vmul.f32 %v1905_v6, %v2423_v54  ;;  %v441_v19 = vsel %vm440_vm7, %v2412_v50, %v439_v4  ;;  %v657_v26 = vadd.f32 1e-06, %v430_v14  ;;  %v451_v27 = vsel %vm449_vm8, %v450_v8, %v448_v16 }
  0xcb   : > { %v444_v29 = vsel %vm442_vm10, %v443_v7, %v441_v19  ;;  %v462_v30 = vsel %vm461_vm9, %v2420_v53, %v460_v13  ;;  %1910 = vrcp.f32 %v658_v21  ;;  %v660_v35 = vadd.f32 1e-06, %v451_v27 }
  0xcc   : > { %v1907_v17 = vpop.eup %1906  ;;  %v455_v34 = vsel %vm454_vm11, %v2423_v54, %v453_v18  ;;  %1912 = vrcp.f32 %v657_v26  ;;  %v659_v37 = vadd.f32 1e-06, %v444_v29  ;;  %v465_v38 = vsel %vm463_vm12, %v464_v25, %v462_v30 }
  0xcd   : > { %v1909_v20 = vpop.eup %1908  ;;  %v474_v28 = vmul.f32 %v1907_v17, %v2428_v55  ;;  %v458_v40 = vsel %vm456_vm14, %v457_v22, %v455_v34  ;;  %1914 = vrcp.f32 %v660_v35  ;;  %v662_v43 = vadd.f32 1e-06, %v465_v38 }
  0xce   : > { %v467_v31 = vmul.f32 %v1909_v20, %v2430_v57  ;;  %1916 = vrcp.f32 %v659_v37  ;;  %v661_v44 = vadd.f32 1e-06, %v458_v40  ;;  %v769_v21 = vlaneseq }
  0xcf   : > { %v476_v41 = vsel %vm475_vm13, %v2428_v55, %v474_v28  ;;  %1918 = vrcp.f32 %v662_v43 }
  0xd0   : > { %v469_v42 = vsel %vm468_vm15, %v2430_v57, %v467_v31  ;;  %v479_v45 = vsel %vm477_vm1, %v478_v36, %v476_v41  ;;  %1920 = vrcp.f32 %v661_v44  ;;  %v2523_v22 = vand.u32 127, %v769_v21 }
  0xd1   : > { %v472_v46 = vsel %vm470_vm2, %v471_v39, %v469_v42  ;;  %v664_v47 = vadd.f32 1e-06, %v479_v45 }
  0xd2   : > { %v663_v48 = vadd.f32 1e-06, %v472_v46 }
  0xd3   : > { %1922 = vrcp.f32 %v664_v47 }
  0xd4   : > { %1924 = vrcp.f32 %v663_v48 }
  0xd5   : > { %v1911_v56 = vpop.eup %1910 }
  0xd6   : > { %v1913_v59 = vpop.eup %1912 }
  0xd7   : > { %v1915_v63 = vpop.eup %1914 }
  0xd8   : > { %v1917_v1 = vpop.eup %1916 }
  0xd9   : > { %v1919_v5 = vpop.eup %1918 }
  0xda   : > { %v1921_v7 = vpop.eup %1920 }
  0xdd   : > { %v1923_v14 = vpop.eup %1922 }
  0xde   : > { %v1925_v17 = vpop.eup %1924 }
 0x134   : > { %v1702_v58 = vpop.f32.mrb[0].mxu0 }
 0x135   : > { %v2480_v60 = vmul.f32 %v1911_v56, %v1702_v58  ;;  %v618_v61 = vpop.f32.mrb[1].mxu0 }
 0x136   : > { %v2482_v62 = vmul.f32 %v1913_v59, %v618_v61 }
 0x137   : > { %682 = vst [vmem:[%s2485_s21 + $0x8] sm:$0xff] %v2480_v60  ;;  %691 = vmax.xlane.f32.xlu1 %v2480_v60 }
 0x138   : > { %681 = vst [vmem:[%s2485_s21] sm:$0xff] %v2482_v62  ;;  %v1705_v0 = vpop.f32.mrb[2].mxu0  ;;  %689 = vmax.xlane.f32.xlu0 %v2482_v62 }
 0x139   : > { %v2493_v2 = vmul.f32 %v1915_v63, %v1705_v0  ;;  %v628_v3 = vpop.f32.mrb[3].mxu0 }
 0x13a   : > { %v2495_v4 = vmul.f32 %v1917_v1, %v628_v3 }
 0x13b   : > { %684 = vst [vmem:[%s2485_s21 + $0x18] sm:$0xff] %v2493_v2  ;;  %695 = vmax.xlane.f32.xlu1 %v2493_v2 }
 0x13c   : > { %683 = vst [vmem:[%s2485_s21 + $0x10] sm:$0xff] %v2495_v4  ;;  %v1708_v6 = vpop.f32.mrb[4].mxu0  ;;  %693 = vmax.xlane.f32.xlu0 %v2495_v4 }
 0x13d   : > { %v2503_v8 = vmul.f32 %v1919_v5, %v1708_v6  ;;  %v638_v9 = vpop.f32.mrb[5].mxu0 }
 0x13e   : > { %v2505_v13 = vmul.f32 %v1921_v7, %v638_v9 }
 0x13f   : > { %686 = vst [vmem:[%s2485_s21 + $0x28] sm:$0xff] %v2503_v8  ;;  %699 = vmax.xlane.f32.xlu1 %v2503_v8 }
 0x140   : > { %685 = vst [vmem:[%s2485_s21 + $0x20] sm:$0xff] %v2505_v13  ;;  %v1711_v16 = vpop.f32.mrb[6].mxu0  ;;  %697 = vmax.xlane.f32.xlu0 %v2505_v13 }
 0x141   : > { %v2513_v18 = vmul.f32 %v1923_v14, %v1711_v16  ;;  %v648_v19 = vpop.f32.mrb[7].mxu0 }
 0x142   : > { %v2515_v20 = vmul.f32 %v1925_v17, %v648_v19 }
 0x143   : > { %688 = vst [vmem:[%s2485_s21 + $0x38] sm:$0xff] %v2513_v18  ;;  %703 = vmax.xlane.f32.xlu1 %v2513_v18 }
 0x144   : > { %687 = vst [vmem:[%s2485_s21 + $0x30] sm:$0xff] %v2515_v20  ;;  %701 = vmax.xlane.f32.xlu0 %v2515_v20 }
 0x1c4   : > { %v2525_v25 = vpop.xlane.xlu1 %691 }
 0x1c5   : > { %vm772_vm3 = vcmp.eq.f32.partialorder %v2480_v60, %v2525_v25  ;;  %v2529_v26 = vpop.xlane.xlu0 %689 }
 0x1c6   : > { %v780_v27 = vsel %vm772_vm3, %v2523_v22, 128  ;;  %vm771_vm4 = vcmp.eq.f32.partialorder %v2482_v62, %v2529_v26 }
 0x1c7   : > { %v779_v28 = vsel %vm771_vm4, %v2523_v22, 128  ;;  %v802_v29 = vshra.s32 %v780_v27, 16  ;;  %v801_v7 = vand.u32 65535, %v780_v27  ;;  %vm899_vm4 = vcmask 7168  }
 0x1c8   : > { %v2535_v30 = vpop.xlane.xlu1 %695  ;;  %v788_v31 = vshra.s32 %v779_v28, 16  ;;  %v787_v9 = vand.u32 65535, %v779_v28 }
 0x1c9   : > { %vm774_vm5 = vcmp.eq.f32.partialorder %v2493_v2, %v2535_v30  ;;  %v2539_v34 = vpop.xlane.xlu0 %693  ;;  %v804_v35 = vcvt.s32.f32 %v802_v29  ;;  %v803_v16 = vcvt.s32.f32 %v801_v7 }
 0x1ca   : > { %v782_v36 = vsel %vm774_vm5, %v2523_v22, 128  ;;  %vm773_vm6 = vcmp.eq.f32.partialorder %v2495_v4, %v2539_v34  ;;  %v790_v38 = vcvt.s32.f32 %v788_v31  ;;  %v789_v29 = vcvt.s32.f32 %v787_v9 }
 0x1cb   : > { %v781_v37 = vsel %vm773_vm6, %v2523_v22, 128  ;;  %805 = vmin.xlane.f32.xlu1 %v804_v35  ;;  %v830_v39 = vshra.s32 %v782_v36, 16  ;;  %v829_v17 = vand.u32 65535, %v782_v36 }
 0x1cc   : > { %v2545_v40 = vpop.xlane.xlu1 %699  ;;  %v816_v41 = vshra.s32 %v781_v37, 16  ;;  %791 = vmin.xlane.f32.xlu0 %v790_v38  ;;  %v815_v31 = vand.u32 65535, %v781_v37 }
 0x1cd   : > { %vm776_vm7 = vcmp.eq.f32.partialorder %v2503_v8, %v2545_v40  ;;  %v2549_v42 = vpop.xlane.xlu0 %697  ;;  %v832_v43 = vcvt.s32.f32 %v830_v39 }
 0x1ce   : > { %v784_v44 = vsel %vm776_vm7, %v2523_v22, 128  ;;  %vm775_vm8 = vcmp.eq.f32.partialorder %v2505_v13, %v2549_v42  ;;  %v818_v46 = vcvt.s32.f32 %v816_v41  ;;  %v817_v27 = vcvt.s32.f32 %v815_v31 }
 0x1cf   : > { %v783_v45 = vsel %vm775_vm8, %v2523_v22, 128  ;;  %833 = vmin.xlane.f32.xlu1 %v832_v43  ;;  %v858_v47 = vshra.s32 %v784_v44, 16 }
 0x1d0   : > { %v2555_v48 = vpop.xlane.xlu1 %703  ;;  %v844_v56 = vshra.s32 %v783_v45, 16  ;;  %819 = vmin.xlane.f32.xlu0 %v818_v46  ;;  %v843_v28 = vand.u32 65535, %v783_v45 }
 0x1d1   : > { %vm778_vm9 = vcmp.eq.f32.partialorder %v2513_v18, %v2555_v48  ;;  %v2559_v58 = vpop.xlane.xlu0 %701  ;;  %v860_v59 = vcvt.s32.f32 %v858_v47  ;;  %v831_v47 = vcvt.s32.f32 %v829_v17 }
 0x1d2   : > { %v786_v61 = vsel %vm778_vm9, %v2523_v22, 128  ;;  %vm777_vm10 = vcmp.eq.f32.partialorder %v2515_v20, %v2559_v58  ;;  %v846_v0 = vcvt.s32.f32 %v844_v56  ;;  %v857_v56 = vand.u32 65535, %v784_v44 }
 0x1d3   : > { %v785_v63 = vsel %vm777_vm10, %v2523_v22, 128  ;;  %861 = vmin.xlane.f32.xlu1 %v860_v59  ;;  %v886_v1 = vshra.s32 %v786_v61, 16  ;;  %v845_v9 = vcvt.s32.f32 %v843_v28 }
 0x1d4   : > { %v872_v3 = vshra.s32 %v785_v63, 16  ;;  %847 = vmin.xlane.f32.xlu0 %v846_v0  ;;  %v859_v7 = vcvt.s32.f32 %v857_v56  ;;  %v871_v17 = vand.u32 65535, %v785_v63 }
 0x1d5   : > { %v888_v5 = vcvt.s32.f32 %v886_v1 }
 0x1d6   : > { %v874_v6 = vcvt.s32.f32 %v872_v3 }
 0x1d7   : > { %889 = vmin.xlane.f32.xlu1 %v888_v5 }
 0x1d8   : > { %875 = vmin.xlane.f32.xlu0 %v874_v6 }
 0x258   : > { %v806_v14 = vpop.xlane.xlu1 %805 }
 0x259   : > { %vm807_vm11 = vcmp.eq.f32.partialorder %v804_v35, %v806_v14  ;;  %v792_v19 = vpop.xlane.xlu0 %791  ;;  %v812_v63 = vcvt.f32.s32 %v806_v14 }
 0x25a   : > { %v808_v21 = vsel %vm807_vm11, %v803_v16, inf  ;;  %vm793_vm12 = vcmp.eq.f32.partialorder %v790_v38, %v792_v19  ;;  %v885_v16 = vand.u32 65535, %v786_v61 }
 0x25b   : > { %809 = vmin.xlane.f32.xlu1 %v808_v21  ;;  %v794_v41 = vsel %vm793_vm12, %v789_v29, inf  ;;  %v798_v29 = vcvt.f32.s32 %v792_v19 }
 0x25c   : > { %v834_v39 = vpop.xlane.xlu1 %833  ;;  %795 = vmin.xlane.f32.xlu0 %v794_v41  ;;  %v887_v45 = vcvt.s32.f32 %v885_v16  ;;  %v813_v41 = vshll.u32 %v812_v63, 16 }
 0x25d   : > { %vm835_vm13 = vcmp.eq.f32.partialorder %v832_v43, %v834_v39  ;;  %v820_v1 = vpop.xlane.xlu0 %819 }
 0x25e   : > { %v836_v3 = vsel %vm835_vm13, %v831_v47, inf  ;;  %vm821_vm14 = vcmp.eq.f32.partialorder %v818_v46, %v820_v1 }
 0x25f   : > { %837 = vmin.xlane.f32.xlu1 %v836_v3  ;;  %v822_v35 = vsel %vm821_vm14, %v817_v27, inf  ;;  %v799_v3 = vshll.u32 %v798_v29, 16 }
 0x260   : > { %v862_v36 = vpop.xlane.xlu1 %861  ;;  %823 = vmin.xlane.f32.xlu0 %v822_v35 }
 0x261   : > { %vm863_vm15 = vcmp.eq.f32.partialorder %v860_v59, %v862_v36  ;;  %v2565_v37 = vpop.xlane.xlu0 %847  ;;  %v873_v59 = vcvt.s32.f32 %v871_v17  ;;  %v868_v19 = vcvt.f32.s32 %v862_v36 }
 0x262   : > { %v864_v38 = vsel %vm863_vm15, %v859_v7, inf  ;;  %vm849_vm1 = vcmp.eq.f32.partialorder %v846_v0, %v2565_v37  ;;  %v840_v0 = vcvt.f32.s32 %v834_v39 }
 0x263   : > { %865 = vmin.xlane.f32.xlu1 %v864_v38  ;;  %v850_v44 = vsel %vm849_vm1, %v845_v9, inf  ;;  %v854_v9 = vcvt.f32.s32 %v2565_v37  ;;  %v869_v36 = vshll.u32 %v868_v19, 16 }
 0x264   : > { %v2568_v43 = vpop.xlane.xlu1 %889  ;;  %851 = vmin.xlane.f32.xlu0 %v850_v44  ;;  %v841_v14 = vshll.u32 %v840_v0, 16 }
 0x265   : > { %vm891_vm2 = vcmp.eq.f32.partialorder %v888_v5, %v2568_v43  ;;  %v2571_v46 = vpop.xlane.xlu0 %875  ;;  %v826_v5 = vcvt.f32.s32 %v820_v1  ;;  %v2146_v1 = vmov 0.0  }
 0x266   : > { %v892_v61 = vsel %vm891_vm2, %v887_v45, inf  ;;  %vm877_vm3 = vcmp.eq.f32.partialorder %v874_v6, %v2571_v46  ;;  %v896_v45 = vcvt.f32.s32 %v2568_v43  ;;  %v882_v43 = vcvt.f32.s32 %v2571_v46 }
 0x267   : > { %893 = vmin.xlane.f32.xlu1 %v892_v61  ;;  %v878_v21 = vsel %vm877_vm3, %v873_v59, inf  ;;  %v827_v7 = vshll.u32 %v826_v5, 16  ;;  %v2147_v59 = vmov 1.0  }
 0x268   : > { %879 = vmin.xlane.f32.xlu0 %v878_v21  ;;  %v883_v19 = vshll.u32 %v882_v43, 16 }
 0x2e8   : > { %v810_v31 = vpop.xlane.xlu1 %809 }
 0x2e9   : > { %v811_v47 = vcvt.f32.s32 %v810_v31  ;;  %v796_v56 = vpop.xlane.xlu0 %795 }
 0x2ea   : > { %v797_v27 = vcvt.f32.s32 %v796_v56  ;;  %v897_v56 = vshll.u32 %v896_v45, 16 }
 0x2eb   : > { %v814_v6 = vadd.s32 %v813_v41, %v811_v47  ;;  %v855_v41 = vshll.u32 %v854_v9, 16 }
 0x2ec   : > { %v838_v39 = vpop.xlane.xlu1 %837  ;;  %v800_v35 = vadd.s32 %v799_v3, %v797_v27 }
 0x2ed   : > { %901 = vst.msk [vmem:[%s2579_s13 + $0x8] sm:$0xff] %vm899_vm4, %v814_v6  ;;  %v839_v28 = vcvt.f32.s32 %v838_v39  ;;  %vm909_vm5 = vcmp.eq.s32.totalorder %v2523_v22, %v814_v6  ;;  %v824_v16 = vpop.xlane.xlu0 %823 }
 0x2ee   : > { %v1587_v38 = vsel %vm909_vm5, 1.0, %v2146_v1  ;;  %v825_v44 = vcvt.f32.s32 %v824_v16  ;;  %900 = vst.msk [vmem:[%s2579_s13] sm:$0xff] %vm899_vm4, %v800_v35  ;;  %vm908_vm6 = vcmp.eq.s32.totalorder %v2523_v22, %v800_v35 }
 0x2ef   : > { %v842_v17 = vadd.s32 %v841_v14, %v839_v28  ;;  %933 = vst [vmem:[%s2592_s23 + $0x8] sm:$0xff] %v1587_v38  ;;  %v1586_v61 = vsel %vm908_vm6, 1.0, %v2146_v1  ;;  %1744 = vmatprep.mubr.msk.f32.mxu1 %vm908_vm6, %v2147_v59 }
 0x2f0   : > { %v866_v37 = vpop.xlane.xlu1 %865  ;;  %v828_v21 = vadd.s32 %v827_v7, %v825_v44  ;;  %932 = vst [vmem:[%s2592_s23] sm:$0xff] %v1586_v61  ;;  %v1205_v63 = vadd.f32 %v1587_v38, %v1586_v61  ;;  %1745 = vmatmul.mubr.msk.f32.vlgmr.msra.gmra.mrb[0].mxu1 %vm909_vm5, %v2147_v59 }
 0x2f1   : > { %903 = vst.msk [vmem:[%s2579_s13 + $0x18] sm:$0xff] %vm899_vm4, %v842_v17  ;;  %v867_v29 = vcvt.f32.s32 %v866_v37  ;;  %vm911_vm7 = vcmp.eq.s32.totalorder %v2523_v22, %v842_v17  ;;  %v852_v0 = vpop.xlane.xlu0 %851 }
 0x2f2   : > { %v1589_v31 = vsel %vm911_vm7, 1.0, %v2146_v1  ;;  %902 = vst.msk [vmem:[%s2579_s13 + $0x10] sm:$0xff] %vm899_vm4, %v828_v21  ;;  %v853_v5 = vcvt.f32.s32 %v852_v0  ;;  %vm910_vm8 = vcmp.eq.s32.totalorder %v2523_v22, %v828_v21 }
 0x2f3   : > { %v870_v47 = vadd.s32 %v869_v36, %v867_v29  ;;  %935 = vst [vmem:[%s2592_s23 + $0x18] sm:$0xff] %v1589_v31  ;;  %v1588_v3 = vsel %vm910_vm8, 1.0, %v2146_v1  ;;  %1747 = vmatprep.mubr.msk.f32.mxu1 %vm910_vm8, %v2147_v59 }
 0x2f4   : > { %v894_v6 = vpop.xlane.xlu1 %893  ;;  %v856_v46 = vadd.s32 %v855_v41, %v853_v5  ;;  %934 = vst [vmem:[%s2592_s23 + $0x10] sm:$0xff] %v1588_v3  ;;  %v1206_v27 = vadd.f32 %v1588_v3, %v1205_v63  ;;  %1748 = vmatmul.mubr.msk.f32.gmra.mrb[2].mxu1 %vm911_vm7, %v2147_v59 }
 0x2f5   : > { %905 = vst.msk [vmem:[%s2579_s13 + $0x28] sm:$0xff] %vm899_vm4, %v870_v47  ;;  %v895_v14 = vcvt.f32.s32 %v894_v6  ;;  %vm913_vm9 = vcmp.eq.s32.totalorder %v2523_v22, %v870_v47  ;;  %v880_v39 = vpop.xlane.xlu0 %879 }
 0x2f6   : > { %v1591_v28 = vsel %vm913_vm9, 1.0, %v2146_v1  ;;  %904 = vst.msk [vmem:[%s2579_s13 + $0x20] sm:$0xff] %vm899_vm4, %v856_v46  ;;  %v1207_v7 = vadd.f32 %v1589_v31, %v1206_v27  ;;  %v881_v16 = vcvt.f32.s32 %v880_v39  ;;  %vm912_vm10 = vcmp.eq.s32.totalorder %v2523_v22, %v856_v46 }
 0x2f7   : > { %v898_v35 = vadd.s32 %v897_v56, %v895_v14  ;;  %937 = vst [vmem:[%s2592_s23 + $0x28] sm:$0xff] %v1591_v28  ;;  %v1590_v38 = vsel %vm912_vm10, 1.0, %v2146_v1  ;;  %1750 = vmatprep.mubr.msk.f32.mxu1 %vm912_vm10, %v2147_v59 }
 0x2f8   : > { %v884_v9 = vadd.s32 %v883_v19, %v881_v16  ;;  %936 = vst [vmem:[%s2592_s23 + $0x20] sm:$0xff] %v1590_v38  ;;  %v1208_v17 = vadd.f32 %v1590_v38, %v1207_v7  ;;  %1751 = vmatmul.mubr.msk.f32.gmra.mrb[4].mxu1 %vm913_vm9, %v2147_v59 }
 0x2f9   : > { %907 = vst.msk [vmem:[%s2579_s13 + $0x38] sm:$0xff] %vm899_vm4, %v898_v35  ;;  %vm915_vm11 = vcmp.eq.s32.totalorder %v2523_v22, %v898_v35 }
 0x2fa   : > { %v1593_v44 = vsel %vm915_vm11, 1.0, %v2146_v1  ;;  %906 = vst.msk [vmem:[%s2579_s13 + $0x30] sm:$0xff] %vm899_vm4, %v884_v9  ;;  %v1209_v36 = vadd.f32 %v1591_v28, %v1208_v17  ;;  %vm914_vm12 = vcmp.eq.s32.totalorder %v2523_v22, %v884_v9 }
 0x2fb   : > { %939 = vst [vmem:[%s2592_s23 + $0x38] sm:$0xff] %v1593_v44  ;;  %v1592_v45 = vsel %vm914_vm12, 1.0, %v2146_v1  ;;  %1753 = vmatprep.mubr.msk.f32.mxu1 %vm914_vm12, %v2147_v59 }
 0x2fc   : > { %938 = vst [vmem:[%s2592_s23 + $0x30] sm:$0xff] %v1592_v45  ;;  %v1210_v61 = vadd.f32 %v1592_v45, %v1209_v36  ;;  %1754 = vmatmul.mubr.msk.f32.gmra.mrb[6].mxu1 %vm915_vm11, %v2147_v59 }
 0x2fe   : > { %v1211_v37 = vadd.f32 %v1593_v44, %v1210_v61  ;;  %v705_v44 = vsub.f32 %v2482_v62, %v2529_v26  ;;  %v707_v62 = vsub.f32 %v2495_v4, %v2539_v34 }
 0x300   : > { %v1212_v21 = vrot.slane %v1211_v37, 4 }
 0x302   : > { %v1213_v63 = vadd.f32 %v1212_v21, %v1211_v37 }
 0x304   : > { %v1214_v29 = vrot.slane %v1213_v63, 2 }
 0x306   : > { %v1215_v43 = vadd.f32 %v1214_v29, %v1213_v63  ;;  %v706_v63 = vsub.f32 %v2480_v60, %v2525_v25  ;;  %v713_v29 = vmul.f32 1.442695, %v705_v44  ;;  %v717_v60 = vmul.f32 1.442695, %v707_v62 }
 0x307   : > { %v709_v25 = vsub.f32 %v2505_v13, %v2549_v42 }
 0x308   : > { %v1216_v0 = vrot.slane %v1215_v43, 1  ;;  %1926 = vpow2.f32 %v713_v29 }
 0x30a   : > { %v1217_v22 = vadd.f32 %v1216_v0, %v1215_v43 }
 0x30c   : > { %1218 = vst [vmem:[%s363_s20] sm:$0x1] %v1217_v22  ;;  %v715_v22 = vmul.f32 1.442695, %v706_v63 }
 0x30e   : > { %1928 = vpow2.f32 %v715_v22 }
 0x30f   : > { %1930 = vpow2.f32 %v717_v60 }
 0x3c3   : > { %v1746_v1 = vpop.f32.mrb[0].mxu1 }
 0x3c4   : > { %1046 = vst.msk [vmem:[%s2648_s22 + $0x8] sm:$0xff] %vm399_vm0, %v1746_v1  ;;  %v1006_v59 = vpop.f32.mrb[1].mxu1  ;;  %v1086_v31 = vmul.f32 %v1746_v1, %v1746_v1  ;;  %v1054_v61 = vmul.f32 %v1746_v1, %v2294_v11 }
 0x3c5   : > { %1045 = vst.msk [vmem:[%s2648_s22] sm:$0xff] %vm399_vm0, %v1006_v59  ;;  %v1085_v41 = vmul.f32 %v1006_v59, %v1006_v59  ;;  %v1053_v21 = vmul.f32 %v1006_v59, %v2291_v10  ;;  %v708_v10 = vsub.f32 %v2493_v2, %v2535_v30  ;;  %v710_v2 = vsub.f32 %v2503_v8, %v2545_v40 }
 0x3c6   : > { %v1096_v47 = vsel %vm399_vm0, %v1086_v31, 0.0  ;;  %v1064_v26 = vsel %vm399_vm0, %v1054_v61, 0.0  ;;  %v721_v30 = vmul.f32 1.442695, %v709_v25  ;;  %v711_v8 = vsub.f32 %v2515_v20, %v2559_v58  ;;  %v2704_v31 = vpop.eup %1926 }
 0x3c7   : > { %1097 = vadd.xlane.f32.xlu1 %v1096_v47  ;;  %v1749_v5 = vpop.f32.mrb[2].mxu1  ;;  %v1093_v56 = vsel %vm399_vm0, %v1085_v41, 0.0  ;;  %v1061_v11 = vsel %vm399_vm0, %v1053_v21, 0.0  ;;  %v723_v42 = vmul.f32 1.442695, %v710_v2  ;;  %v2707_v47 = vpop.eup %1928 }
 0x3c8   : > { %1048 = vst.msk [vmem:[%s2648_s22 + $0x18] sm:$0xff] %vm399_vm0, %v1749_v5  ;;  %1094 = vadd.xlane.f32.xlu0 %v1093_v56  ;;  %v1016_v3 = vpop.f32.mrb[3].mxu1  ;;  %v1088_v6 = vmul.f32 %v1749_v5, %v1749_v5  ;;  %v1056_v43 = vmul.f32 %v1749_v5, %v2308_v15  ;;  %v725_v41 = vmul.f32 1.442695, %v711_v8  ;;  %v2709_v5 = vpop.eup %1930 }
 0x3c9   : > { %1047 = vst.msk [vmem:[%s2648_s22 + $0x10] sm:$0xff] %vm399_vm0, %v1016_v3  ;;  %v1087_v46 = vmul.f32 %v1016_v3, %v1016_v3  ;;  %v1055_v0 = vmul.f32 %v1016_v3, %v2297_v12  ;;  %v719_v12 = vmul.f32 1.442695, %v708_v10 }
 0x3ca   : > { %v1102_v27 = vsel %vm399_vm0, %v1088_v6, 0.0  ;;  %v1070_v4 = vsel %vm399_vm0, %v1056_v43, 0.0 }
 0x3cb   : > { %1103 = vadd.xlane.f32.xlu1 %v1102_v27  ;;  %v1752_v14 = vpop.f32.mrb[4].mxu1  ;;  %v1099_v19 = vsel %vm399_vm0, %v1087_v46, 0.0  ;;  %v1067_v15 = vsel %vm399_vm0, %v1055_v0, 0.0  ;;  %1932 = vpow2.f32 %v719_v12 }
 0x3cc   : > { %1050 = vst.msk [vmem:[%s2648_s22 + $0x28] sm:$0xff] %vm399_vm0, %v1752_v14  ;;  %1100 = vadd.xlane.f32.xlu0 %v1099_v19  ;;  %v1026_v39 = vpop.f32.mrb[5].mxu1  ;;  %v1090_v28 = vmul.f32 %v1752_v14, %v1752_v14  ;;  %v1058_v34 = vmul.f32 %v1752_v14, %v2324_v24  ;;  %1934 = vpow2.f32 %v721_v30 }
 0x3cd   : > { %1049 = vst.msk [vmem:[%s2648_s22 + $0x20] sm:$0xff] %vm399_vm0, %v1026_v39  ;;  %v1089_v35 = vmul.f32 %v1026_v39, %v1026_v39  ;;  %v1057_v1 = vmul.f32 %v1026_v39, %v2321_v23  ;;  %v712_v23 = vsub.f32 %v2513_v18, %v2555_v48  ;;  %1936 = vpow2.f32 %v723_v42 }
 0x3ce   : > { %v1108_v7 = vsel %vm399_vm0, %v1090_v28, 0.0  ;;  %v1076_v59 = vsel %vm399_vm0, %v1058_v34, 0.0 }
 0x3cf   : > { %1109 = vadd.xlane.f32.xlu1 %v1108_v7  ;;  %v1755_v16 = vpop.f32.mrb[6].mxu1  ;;  %v1105_v38 = vsel %vm399_vm0, %v1089_v35, 0.0  ;;  %v1073_v24 = vsel %vm399_vm0, %v1057_v1, 0.0 }
 0x3d0   : > { %1052 = vst.msk [vmem:[%s2648_s22 + $0x38] sm:$0xff] %vm399_vm0, %v1755_v16  ;;  %1106 = vadd.xlane.f32.xlu0 %v1105_v38  ;;  %v1036_v9 = vpop.f32.mrb[7].mxu1  ;;  %v1092_v17 = vmul.f32 %v1755_v16, %v1755_v16  ;;  %v1060_v13 = vmul.f32 %v1755_v16, %v2346_v33  ;;  %v727_v33 = vmul.f32 1.442695, %v712_v23 }
 0x3d1   : > { %1051 = vst.msk [vmem:[%s2648_s22 + $0x30] sm:$0xff] %vm399_vm0, %v1036_v9  ;;  %v1091_v36 = vmul.f32 %v1036_v9, %v1036_v9  ;;  %v1059_v48 = vmul.f32 %v1036_v9, %v2343_v32 }
 0x3d2   : > { %v1114_v45 = vsel %vm399_vm0, %v1092_v17, 0.0  ;;  %v1082_v40 = vsel %vm399_vm0, %v1060_v13, 0.0  ;;  %1938 = vpow2.f32 %v727_v33 }
 0x3d3   : > { %1115 = vadd.xlane.f32.xlu1 %v1114_v45  ;;  %v1111_v37 = vsel %vm399_vm0, %v1091_v36, 0.0  ;;  %1940 = vpow2.f32 %v725_v41  ;;  %v1079_v56 = vsel %vm399_vm0, %v1059_v48, 0.0 }
 0x3d4   : > { %1112 = vadd.xlane.f32.xlu0 %v1111_v37 }
 0x3d5   : > { %v2713_v18 = vpop.eup %1932 }
 0x3d6   : > { %v2715_v20 = vpop.eup %1934 }
 0x3d7   : > { %1065 = vadd.xlane.f32.xlu1 %v1064_v26  ;;  %v2720_v58 = vpop.eup %1936 }
 0x3d8   : > { %1062 = vadd.xlane.f32.xlu0 %v1061_v11 }
 0x3db   : > { %1071 = vadd.xlane.f32.xlu1 %v1070_v4 }
 0x3dc   : > { %1068 = vadd.xlane.f32.xlu0 %v1067_v15  ;;  %v2724_v3 = vpop.eup %1938 }
 0x3dd   : > { %v2726_v6 = vpop.eup %1940 }
 0x3df   : > { %1077 = vadd.xlane.f32.xlu1 %v1076_v59 }
 0x3e0   : > { %1074 = vadd.xlane.f32.xlu0 %v1073_v24 }
 0x3e3   : > { %1083 = vadd.xlane.f32.xlu1 %v1082_v40 }
 0x3e4   : > { %729 = vadd.xlane.f32.xlu0 %v2704_v31 }
 0x3e7   : > { %731 = vadd.xlane.f32.xlu1 %v2707_v47 }
 0x3e8   : > { %733 = vadd.xlane.f32.xlu0 %v2709_v5 }
 0x3eb   : > { %735 = vadd.xlane.f32.xlu1 %v2713_v18 }
 0x3ec   : > { %737 = vadd.xlane.f32.xlu0 %v2715_v20 }
 0x3ef   : > { %739 = vadd.xlane.f32.xlu1 %v2720_v58 }
 0x3f0   : > { %1080 = vadd.xlane.f32.xlu0 %v1079_v56 }
 0x3f3   : > { %743 = vadd.xlane.f32.xlu1 %v2724_v3 }
 0x3f4   : > { %741 = vadd.xlane.f32.xlu0 %v2726_v6 }
 0x3f5   : > { %2003 = shalt.err (!%p2000_p4)
}
 0x3f6   : > { %s2004_s21 = scalar_lea.hbm %s2737_s17, 1024  ;;  %s2008_s0 = scalar_lea.hbm %s3003_s2, 2048 }
 0x3f7   : > { %p2005_p7 = scmp.ne.s32.totalorder %s2737_s17, %s2004_s21  ;;  %p2009_p10 = scmp.lt.u32.totalorder %s2737_s17, %s3003_s2 }
 0x3f8   : > { %p2010_p11 = scmp.lt.u32.totalorder %s2008_s0, %s2004_s21  ;;  %p2012_p13 = scmp.lt.u32.totalorder %s2004_s21, %s2737_s17 }
 0x3f9   : > { %p2006_p8 = pnand %p2005_p7, %p2239_p5 }
 0x3fa   : > { %p2011_p12 = por %p2010_p11, %p2009_p10 }
 0x3fb   : > { %p2007_p9 = pneg %p2006_p8 }
 0x3fc   : > { %p2013_p0 = por %p2012_p13, %p2011_p12 }
 0x3fe   : > { %p2014_p1 = pnand %p2013_p0, %p2007_p9 }
 0x400   : > { %2017 = shalt.err (!%p2014_p1)
}
 0x401   : > { %s2149_s6 = smov 128   ;;  %s2150_s10 = smov 8  }
 0x402   : > { %s3004_s20 = scalar_lea.sflag [#allocation3], %s2475_s24  ;;  %s2773_s13 = scalar_lea.hbm %s2984_s5, %s2731_s26 }
 0x403   : > { %1836 = dma.vmem_to_hbm [thread:$0]  (%p2239_p5), %s2740_s19, 1024, %s2737_s17, %s3004_s20, %s2149_s6, %s2149_s6, %s2150_s10  }
 0x404   : > { %s1322_s0 = sshll.u32 %s2648_s22, 4  ;;  %s1250_s1 = scalar_lea.sflag [#allocation8], %s2475_s24  ;;  %s2776_s0 = int_to_ptr.vmem [resolvable:$true] %s1322_s0 }
 0x405   : > { %s2018_s2 = scalar_lea.vmem %s2776_s0, 1024  ;;  %s2151_s7 = smov [#allocation7]  }
 0x406   : > { %p2019_p2 = scmp.ne.s32.totalorder %s2776_s0, %s2018_s2  ;;  %s2022_s14 = sshll.u32 %s2151_s7, 4  ;;  %s2023_s14 = int_to_ptr.vmem [resolvable:$false] %s2022_s14 }
 0x407   : > { %s2024_s17 = scalar_lea.vmem %s2023_s14, 2048  ;;  %p2025_p7 = scmp.lt.s32.totalorder %s2776_s0, %s2023_s14 }
 0x408   : > { %p2020_p3 = pnand %p2019_p2, %p2239_p5  ;;  %p2026_p8 = scmp.lt.s32.totalorder %s2024_s17, %s2018_s2 }
 0x40a   : > { %p2021_p4 = pneg %p2020_p3  ;;  %p2027_p9 = por %p2026_p8, %p2025_p7 }
 0x40c   : > { %p2028_p10 = pnand %p2027_p9, %p2021_p4 }
 0x40e   : > { %2031 = shalt.err (!%p2028_p10)
}
 0x40f   : > { %s2032_s22 = scalar_lea.hbm %s2773_s13, 1024  ;;  %s2036_s7 = scalar_lea.hbm %s2984_s5, 2048 }
 0x410   : > { %p2033_p11 = scmp.ne.s32.totalorder %s2773_s13, %s2032_s22  ;;  %p2037_p0 = scmp.lt.u32.totalorder %s2773_s13, %s2984_s5 }
 0x411   : > { %p2038_p1 = scmp.lt.u32.totalorder %s2036_s7, %s2032_s22  ;;  %p2040_p3 = scmp.lt.u32.totalorder %s2032_s22, %s2773_s13 }
 0x412   : > { %p2034_p12 = pnand %p2033_p11, %p2239_p5 }
 0x413   : > { %p2039_p2 = por %p2038_p1, %p2037_p0 }
 0x414   : > { %p2035_p13 = pneg %p2034_p12 }
 0x415   : > { %p2041_p4 = por %p2040_p3, %p2039_p2 }
 0x417   : > { %p2042_p7 = pnand %p2041_p4, %p2035_p13 }
 0x419   : > { %2045 = shalt.err (!%p2042_p7)
}
 0x41a   : > { %1839 = dma.vmem_to_hbm [thread:$0]  (%p2239_p5), %s2776_s0, 1024, %s2773_s13, %s1250_s1, %s2149_s6, %s2149_s6, %s2150_s10  }
 0x41b   : > { %s2861_s2 = scalar_lea.vmem [#allocation4], %s2478_s25  ;;  %s1239_s24 = sand.u32 1, %s2220_s9  }
 0x41c   : > { %s1290_s25 = sshll.u32 %s2861_s2, 4  ;;  %s1306_s12 = sshll.u32 %s2592_s23, 4  ;;  %s2886_s25 = int_to_ptr.vmem [resolvable:$true] %s1290_s25  ;;  %s2888_s12 = int_to_ptr.vmem [resolvable:$true] %s1306_s12 }
 0x41d   : > { %s2884_s1 = scalar_lea.hbm %s2982_s3, %s2731_s26  ;;  %s2895_s17 = scalar_lea.hbm %s2983_s4, %s2731_s26 }
 0x41e   : > { %s366_s20 = scalar_lea.vmem %s2987_s8, %s2641_s18  ;;  %s2902_s7 = scalar_lea.sflag [#allocation5], %s1239_s24 }
 0x41f   : > { %s2046_s21 = scalar_lea.vmem %s2886_s25, 1024  ;;  %s2152_s14 = smov [#allocation4]  }
 0x420   : > { %p2047_p8 = scmp.ne.s32.totalorder %s2886_s25, %s2046_s21  ;;  %s2050_s13 = sshll.u32 %s2152_s14, 4  ;;  %s2051_s13 = int_to_ptr.vmem [resolvable:$false] %s2050_s13 }
 0x421   : > { %s2052_s0 = scalar_lea.vmem %s2051_s13, 2048  ;;  %p2053_p11 = scmp.lt.s32.totalorder %s2886_s25, %s2051_s13 }
 0x422   : > { %p2048_p9 = pnand %p2047_p8, %p2239_p5  ;;  %p2054_p12 = scmp.lt.s32.totalorder %s2052_s0, %s2046_s21 }
 0x424   : > { %p2049_p10 = pneg %p2048_p9  ;;  %p2055_p13 = por %p2054_p12, %p2053_p11 }
 0x426   : > { %p2056_p0 = pnand %p2055_p13, %p2049_p10 }
 0x454   : > { %v1098_v32 = vpop.xlane.xlu1 %1097 }
 0x455   : > { %v1118_v46 = vmul.f32 %v1098_v32, %v2414_v51  ;;  %v1095_v27 = vpop.xlane.xlu0 %1094 }
 0x456   : > { %v1117_v14 = vmul.f32 %v1095_v27, %v2410_v49 }
 0x457   : > { %v1126_v19 = vmax.f32 %v1118_v46, 1e-16 }
 0x458   : > { %v1125_v39 = vmax.f32 %v1117_v14, 1e-16  ;;  %v1104_v28 = vpop.xlane.xlu1 %1103 }
 0x459   : > { %1942 = vrsqrt.f32 %v1126_v19  ;;  %v1120_v35 = vmul.f32 %v1104_v28, %v2416_v52  ;;  %v1101_v7 = vpop.xlane.xlu0 %1100  ;;  %vm1142_vm0 = vcmp.eq.f32.partialorder %v1126_v19, inf  ;;  %vm1144_vm13 = vcmp.eq.f32.partialorder %v1126_v19, 0.0 }
 0x45a   : > { %1944 = vrsqrt.f32 %v1125_v39  ;;  %v1119_v16 = vmul.f32 %v1101_v7, %v2412_v50  ;;  %v1145_v26 = vand.u32 2147483648, %v1126_v19  ;;  %vm1135_vm14 = vcmp.eq.f32.partialorder %v1125_v39, inf }
 0x45b   : > { %v1128_v38 = vmax.f32 %v1120_v35, 1e-16  ;;  %v1138_v11 = vand.u32 2147483648, %v1125_v39  ;;  %vm1137_vm15 = vcmp.eq.f32.partialorder %v1125_v39, 0.0 }
 0x45c   : > { %v1127_v9 = vmax.f32 %v1119_v16, 1e-16  ;;  %v1110_v17 = vpop.xlane.xlu1 %1109 }
 0x45d   : > { %1946 = vrsqrt.f32 %v1128_v38  ;;  %v1122_v44 = vmul.f32 %v1110_v17, %v2420_v53  ;;  %v1107_v51 = vpop.xlane.xlu0 %1106  ;;  %vm1156_vm1 = vcmp.eq.f32.partialorder %v1128_v38, inf  ;;  %v1159_v15 = vand.u32 2147483648, %v1128_v38 }
 0x45e   : > { %1948 = vrsqrt.f32 %v1127_v9  ;;  %v1121_v49 = vmul.f32 %v1107_v51, %v2423_v54  ;;  %vm1158_vm2 = vcmp.eq.f32.partialorder %v1128_v38, 0.0  ;;  %vm1149_vm3 = vcmp.eq.f32.partialorder %v1127_v9, inf }
 0x45f   : > { %v2811_v36 = vmax.f32 %v1122_v44, 1e-16  ;;  %v1152_v30 = vand.u32 2147483648, %v1127_v9  ;;  %vm1151_vm4 = vcmp.eq.f32.partialorder %v1127_v9, 0.0 }
 0x460   : > { %v2813_v45 = vmax.f32 %v1121_v49, 1e-16  ;;  %v1116_v61 = vpop.xlane.xlu1 %1115 }
 0x461   : > { %1950 = vrsqrt.f32 %v2811_v36  ;;  %v1124_v52 = vmul.f32 %v1116_v61, %v2428_v55  ;;  %v1113_v50 = vpop.xlane.xlu0 %1112  ;;  %vm1170_vm5 = vcmp.eq.f32.partialorder %v2811_v36, inf  ;;  %v1173_v33 = vand.u32 2147483648, %v2811_v36 }
 0x462   : > { %1952 = vrsqrt.f32 %v2813_v45  ;;  %v1123_v37 = vmul.f32 %v1113_v50, %v2430_v57  ;;  %vm1172_vm6 = vcmp.eq.f32.partialorder %v2811_v36, 0.0  ;;  %vm1163_vm7 = vcmp.eq.f32.partialorder %v2813_v45, inf }
 0x463   : > { %v1943_v21 = vpop.eup %1942  ;;  %v2819_v53 = vmax.f32 %v1124_v52, 1e-16  ;;  %v1166_v32 = vand.u32 2147483648, %v2813_v45  ;;  %vm1165_vm8 = vcmp.eq.f32.partialorder %v2813_v45, 0.0 }
 0x464   : > { %v1945_v63 = vpop.eup %1944  ;;  %v2821_v29 = vmax.f32 %v1123_v37, 1e-16  ;;  %v1141_v54 = vmul.f32 %v1943_v21, %v1126_v19  ;;  %v2823_v62 = vpop.xlane.xlu1 %1065 }
 0x465   : > { %1954 = vrsqrt.f32 %v2819_v53  ;;  %v1134_v55 = vmul.f32 %v1945_v63, %v1125_v39  ;;  %v2826_v43 = vpop.xlane.xlu0 %1062  ;;  %vm1184_vm9 = vcmp.eq.f32.partialorder %v2819_v53, inf  ;;  %vm1186_vm10 = vcmp.eq.f32.partialorder %v2819_v53, 0.0 }
 0x466   : > { %1956 = vrsqrt.f32 %v2821_v29  ;;  %v1143_v57 = vsel %vm1142_vm0, %v1126_v19, %v1141_v54  ;;  %v1187_v7 = vand.u32 2147483648, %v2819_v53  ;;  %vm1177_vm11 = vcmp.eq.f32.partialorder %v2821_v29, inf }
 0x467   : > { %v1947_v0 = vpop.eup %1946  ;;  %v1146_v22 = vsel %vm1144_vm13, %v1145_v26, %v1143_v57  ;;  %v1136_v10 = vsel %vm1135_vm14, %v1125_v39, %v1134_v55  ;;  %v1180_v44 = vand.u32 2147483648, %v2821_v29  ;;  %vm1179_vm12 = vcmp.eq.f32.partialorder %v2821_v29, 0.0 }
 0x468   : > { %v1949_v60 = vpop.eup %1948  ;;  %1958 = vrcp.f32 %v1146_v22  ;;  %v1139_v25 = vsel %vm1137_vm15, %v1138_v11, %v1136_v10  ;;  %v1155_v4 = vmul.f32 %v1947_v0, %v1128_v38  ;;  %v2829_v34 = vpop.xlane.xlu1 %1071 }
 0x469   : > { %1960 = vrcp.f32 %v1139_v25  ;;  %v1148_v1 = vmul.f32 %v1949_v60, %v1127_v9  ;;  %v1069_v12 = vpop.xlane.xlu0 %1068 }
 0x46a   : > { %v1157_v2 = vsel %vm1156_vm1, %v1128_v38, %v1155_v4 }
 0x46b   : > { %v1951_v59 = vpop.eup %1950  ;;  %v1160_v13 = vsel %vm1158_vm2, %v1159_v15, %v1157_v2  ;;  %v1150_v24 = vsel %vm1149_vm3, %v1127_v9, %v1148_v1 }
 0x46c   : > { %v1953_v42 = vpop.eup %1952  ;;  %1962 = vrcp.f32 %v1160_v13  ;;  %v1153_v23 = vsel %vm1151_vm4, %v1152_v30, %v1150_v24  ;;  %v1169_v8 = vmul.f32 %v1951_v59, %v2811_v36  ;;  %v2832_v40 = vpop.xlane.xlu1 %1077 }
 0x46d   : > { %1964 = vrcp.f32 %v1153_v23  ;;  %v1162_v41 = vmul.f32 %v1953_v42, %v2813_v45  ;;  %v1075_v48 = vpop.xlane.xlu0 %1074 }
 0x46e   : > { %v1171_v56 = vsel %vm1170_vm5, %v2811_v36, %v1169_v8 }
 0x46f   : > { %v1955_v46 = vpop.eup %1954  ;;  %v1174_v27 = vsel %vm1172_vm6, %v1173_v33, %v1171_v56  ;;  %v1164_v14 = vsel %vm1163_vm7, %v2813_v45, %v1162_v41 }
 0x470   : > { %v1957_v19 = vpop.eup %1956  ;;  %1966 = vrcp.f32 %v1174_v27  ;;  %v1167_v39 = vsel %vm1165_vm8, %v1166_v32, %v1164_v14  ;;  %v1183_v28 = vmul.f32 %v1955_v46, %v2819_v53  ;;  %v2845_v35 = vpop.xlane.xlu1 %1083 }
 0x471   : > { %1968 = vrcp.f32 %v1167_v39  ;;  %v730_v16 = vpop.xlane.xlu0 %729  ;;  %v1176_v38 = vmul.f32 %v1957_v19, %v2821_v29 }
 0x472   : > { %v1959_v9 = vpop.eup %1958  ;;  %v1185_v17 = vsel %vm1184_vm9, %v2819_v53, %v1183_v28  ;;  %1970 = vrcp.f32 %v730_v16 }
 0x473   : > { %v1961_v51 = vpop.eup %1960  ;;  %v1188_v49 = vsel %vm1186_vm10, %v1187_v7, %v1185_v17  ;;  %v1178_v36 = vsel %vm1177_vm11, %v2821_v29, %v1176_v38  ;;  %v1192_v45 = vmul.f32 %v1959_v9, %v2823_v62 }
 0x474   : > { %v1190_v61 = vmul.f32 %v1961_v51, %v2826_v43  ;;  %1972 = vrcp.f32 %v1188_v49  ;;  %v732_v52 = vpop.xlane.xlu1 %731  ;;  %v1181_v50 = vsel %vm1179_vm12, %v1180_v44, %v1178_v36 }
 0x475   : > { %1974 = vrcp.f32 %v732_v52  ;;  %v734_v37 = vpop.xlane.xlu0 %733 }
 0x476   : > { %v1963_v21 = vpop.eup %1962  ;;  %1976 = vrcp.f32 %v734_v37  ;;  %v1219_v63 = vadd.f32 %v1192_v45, %v1190_v61 }
 0x477   : > { %v1965_v53 = vpop.eup %1964  ;;  %1978 = vrcp.f32 %v1181_v50  ;;  %v1196_v29 = vmul.f32 %v1963_v21, %v2829_v34 }
 0x478   : > { %v1194_v54 = vmul.f32 %v1965_v53, %v1069_v12  ;;  %v736_v26 = vpop.xlane.xlu1 %735 }
 0x479   : > { %1980 = vrcp.f32 %v736_v26  ;;  %v738_v55 = vpop.xlane.xlu0 %737 }
 0x47a   : > { %v1967_v57 = vpop.eup %1966  ;;  %v1220_v62 = vadd.f32 %v1219_v63, %v1194_v54  ;;  %1982 = vrcp.f32 %v738_v55 }
 0x47b   : > { %v1969_v43 = vpop.eup %1968  ;;  %v1200_v15 = vmul.f32 %v1967_v57, %v2832_v40 }
 0x47c   : > { %v1971_v11 = vpop.eup %1970  ;;  %v1221_v0 = vadd.f32 %v1220_v62, %v1196_v29  ;;  %v1198_v22 = vmul.f32 %v1969_v43, %v1075_v48  ;;  %v740_v10 = vpop.xlane.xlu1 %739 }
 0x47d   : > { %v746_v60 = vmul.f32 %v1971_v11, %v2704_v31  ;;  %1984 = vrcp.f32 %v740_v10  ;;  %v1081_v25 = vpop.xlane.xlu0 %1080 }
 0x47e   : > { %v1973_v4 = vpop.eup %1972  ;;  %v1222_v1 = vadd.f32 %v1221_v0, %v1198_v22 }
 0x47f   : > { %v1975_v12 = vpop.eup %1974  ;;  %761 = vst [vmem:[%s2861_s2] sm:$0xff] %v746_v60 }
 0x480   : > { %v1977_v34 = vpop.eup %1976  ;;  %v748_v2 = vmul.f32 %v1975_v12, %v2707_v47  ;;  %v1223_v30 = vadd.f32 %v1222_v1, %v1200_v15  ;;  %v744_v59 = vpop.xlane.xlu1 %743  ;;  %v1204_v47 = vmul.f32 %v1973_v4, %v2845_v35 }
 0x481   : > { %v1979_v31 = vpop.eup %1978  ;;  %v750_v13 = vmul.f32 %v1977_v34, %v2709_v5  ;;  %1986 = vrcp.f32 %v744_v59  ;;  %v742_v24 = vpop.xlane.xlu0 %741 }
 0x482   : > { %762 = vst [vmem:[%s2861_s2 + $0x8] sm:$0xff] %v748_v2  ;;  %v1202_v42 = vmul.f32 %v1979_v31, %v1081_v25  ;;  %1988 = vrcp.f32 %v742_v24 }
 0x483   : > { %v1981_v23 = vpop.eup %1980  ;;  %763 = vst [vmem:[%s2861_s2 + $0x10] sm:$0xff] %v750_v13 }
 0x484   : > { %v1983_v8 = vpop.eup %1982  ;;  %v752_v40 = vmul.f32 %v1981_v23, %v2713_v18  ;;  %v1224_v33 = vadd.f32 %v1223_v30, %v1202_v42 }
 0x485   : > { %v754_v5 = vmul.f32 %v1983_v8, %v2715_v20 }
 0x486   : > { %764 = vst [vmem:[%s2861_s2 + $0x18] sm:$0xff] %v752_v40  ;;  %v1225_v41 = vadd.f32 %v1224_v33, %v1204_v47 }
 0x487   : > { %v1985_v48 = vpop.eup %1984  ;;  %765 = vst [vmem:[%s2861_s2 + $0x20] sm:$0xff] %v754_v5 }
 0x488   : > { %v756_v56 = vmul.f32 %v1985_v48, %v2720_v58  ;;  %v1226_v32 = vrot.slane %v1225_v41, 4 }
 0x48a   : > { %766 = vst [vmem:[%s2861_s2 + $0x28] sm:$0xff] %v756_v56  ;;  %v1227_v46 = vadd.f32 %v1226_v32, %v1225_v41 }
 0x48b   : > { %v1987_v18 = vpop.eup %1986 }
 0x48c   : > { %v1989_v27 = vpop.eup %1988  ;;  %v1228_v20 = vrot.slane %v1227_v46, 2  ;;  %v760_v14 = vmul.f32 %v1987_v18, %v2724_v3 }
 0x48d   : > { %v758_v19 = vmul.f32 %v1989_v27, %v2726_v6 }
 0x48e   : > { %v1229_v58 = vadd.f32 %v1228_v20, %v1227_v46  ;;  %768 = vst [vmem:[%s2861_s2 + $0x38] sm:$0xff] %v760_v14 }
 0x48f   : > { %767 = vst [vmem:[%s2861_s2 + $0x30] sm:$0xff] %v758_v19 }
 0x490   : > { %v1230_v3 = vrot.slane %v1229_v58, 1 }
 0x491   : > { %2059 = shalt.err (!%p2056_p0)
}
 0x492   : > { %s2060_s26 = scalar_lea.hbm %s2884_s1, 1024  ;;  %s2064_s9 = scalar_lea.hbm %s2982_s3, 2048 }
 0x493   : > { %p2061_p1 = scmp.ne.s32.totalorder %s2884_s1, %s2060_s26  ;;  %p2065_p4 = scmp.lt.u32.totalorder %s2884_s1, %s2982_s3 }
 0x494   : > { %p2066_p7 = scmp.lt.u32.totalorder %s2064_s9, %s2060_s26  ;;  %p2068_p9 = scmp.lt.u32.totalorder %s2060_s26, %s2884_s1 }
 0x495   : > { %p2062_p2 = pnand %p2061_p1, %p2239_p5 }
 0x496   : > { %p2067_p8 = por %p2066_p7, %p2065_p4 }
 0x497   : > { %p2063_p3 = pneg %p2062_p2 }
 0x498   : > { %p2069_p10 = por %p2068_p9, %p2067_p8 }
 0x49a   : > { %p2070_p11 = pnand %p2069_p10, %p2063_p3 }
 0x49c   : > { %2073 = shalt.err (!%p2070_p11)
}
 0x49d   : > { %1837 = dma.vmem_to_hbm [thread:$0]  (%p2239_p5), %s2886_s25, 1024, %s2884_s1, %s2902_s7, %s2149_s6, %s2149_s6, %s2150_s10   ;;  %vm1232_vm0 = vcmask 0  }
 0x49e   : > { %s2074_s19 = scalar_lea.vmem %s2888_s12, 1024  ;;  %s2153_s21 = smov [#allocation6]  }
 0x49f   : > { %p2075_p12 = scmp.ne.s32.totalorder %s2888_s12, %s2074_s19  ;;  %s2078_s14 = sshll.u32 %s2153_s21, 4  ;;  %s2079_s14 = int_to_ptr.vmem [resolvable:$false] %s2078_s14 }
 0x4a0   : > { %s2080_s13 = scalar_lea.vmem %s2079_s14, 2048  ;;  %p2081_p1 = scmp.lt.s32.totalorder %s2888_s12, %s2079_s14 }
 0x4a1   : > { %p2076_p13 = pnand %p2075_p12, %p2239_p5  ;;  %p2082_p2 = scmp.lt.s32.totalorder %s2080_s13, %s2074_s19 }
 0x4a3   : > { %p2077_p0 = pneg %p2076_p13  ;;  %p2083_p3 = por %p2082_p2, %p2081_p1 }
 0x4a5   : > { %p2084_p4 = pnand %p2083_p3, %p2077_p0 }
 0x4a7   : > { %2087 = shalt.err (!%p2084_p4)
}
 0x4a8   : > { %s2088_s25 = scalar_lea.hbm %s2895_s17, 1024  ;;  %s2092_s26 = scalar_lea.hbm %s2983_s4, 2048 }
 0x4a9   : > { %p2089_p7 = scmp.ne.s32.totalorder %s2895_s17, %s2088_s25  ;;  %p2093_p10 = scmp.lt.u32.totalorder %s2895_s17, %s2983_s4 }
 0x4aa   : > { %p2094_p11 = scmp.lt.u32.totalorder %s2092_s26, %s2088_s25  ;;  %p2096_p13 = scmp.lt.u32.totalorder %s2088_s25, %s2895_s17 }
 0x4ab   : > { %p2090_p8 = pnand %p2089_p7, %p2239_p5 }
 0x4ac   : > { %p2095_p12 = por %p2094_p11, %p2093_p10 }
 0x4ad   : > { %p2091_p9 = pneg %p2090_p8 }
 0x4ae   : > { %p2097_p0 = por %p2096_p13, %p2095_p12 }
 0x4b0   : > { %p2098_p1 = pnand %p2097_p0, %p2091_p9 }
 0x4b2   : > { %2101 = shalt.err (!%p2098_p1)
}
 0x4b3   : > { %1838 = dma.vmem_to_hbm [thread:$0]  (%p2239_p5), %s2888_s12, 1024, %s2895_s17, %s2902_s7, %s2149_s6, %s2149_s6, %s2150_s10   ;;  %v1231_v6 = vadd.f32 %v1230_v3, %v1229_v58 }
 0x4b5   : > { %1233 = vst.msk [vmem:[%s366_s20] sm:$0x1] %vm1232_vm0, %v1231_v6 }
 0x4b6 PF: > { %p1857_p2 = scmp.ge.s32.totalorder %s2144_s30, 2  ;;  %s1347_s15 = sand.u32 1, %s2132_s27  }
 0x4b7   : > { %s1348_s22 = scalar_lea.sflag [#allocation3], %s1347_s15 }
 0x4b8   : > { %p1845_p3 = pnand %p1857_p2, %p2243_p6 }
 0x4ba   : > { %2119 = dma.done.wait (!%p1845_p3), %s1348_s22, 1024  }
 0x4bb   : > { %2121 = vsyncadd (!%p1845_p3), %s1348_s22, 4294966272  ;;  %s3005_s6 = sadd.s32 4294967294, %s2144_s30  }
 0x4bc   : > { %s1356_s10 = sand.u32 1, %s3005_s6  }
 0x4bd   : > { %s1357_s12 = scalar_lea.sflag [#allocation5], %s1356_s10 }
 0x4be   : > { %2123 = dma.done.wait (!%p1845_p3), %s1357_s12, 2048  }
 0x4bf   : > { %2125 = vsyncadd (!%p1845_p3), %s1357_s12, 4294965248  ;;  %s1375_s17 = scalar_lea.sflag [#allocation8], %s1347_s15 }
 0x4c0   : > { %2127 = dma.done.wait (!%p1845_p3), %s1375_s17, 1024  }
 0x4c1   : > { %2129 = vsyncadd (!%p1845_p3), %s1375_s17, 4294966272  ;;  %s3006_s18 = sld [smem:[#allocation12_spill]]  ;;  %p25_p5 = scmp.ge.s32.totalorder %s2224_s11, 4  }
 0x4c2   : > { %s3007_s27 = smov %s2136_s28  ;;  %s3008_s28 = smov %s2140_s29 }
 0x4c3   : > { %s3010_s30 = smov %s2224_s11  ;;  %27 = sbr.rel (!%p25_p5) target bundleno = 13 (0xd), region = 148 }
 0x4c7   : > { %s3009_s29 = smov %s3006_s18 }
 0x4ca   :  { %1400 = vsyncpa [#allocation3], 1 }
 0x4cb   :  { %1402 = vsyncpa [#allocation3 + $0x1], 1 }
 0x4cc   :  { %1403 = vsyncpa [#allocation5], 1 }
 0x4cd   :  { %1405 = vsyncpa [#allocation5 + $0x1], 1 }
 0x4ce   :  { %1406 = vsyncpa [#allocation8], 1 }
 0x4cf   :  { %1408 = vsyncpa [#allocation8 + $0x1], 1 }

</bundles_post_ra>
